<compile_context>
chip_gen: v6e
topology: v6e:2x2x1
jax: 0.10.0
libtpu: 0.0.40
codegen_flags: <defaults>
</compile_context>

<pallas_src>
import functools

import jax
import jax.numpy as jnp
from jax.experimental import pallas as pl
from jax.experimental.pallas import tpu as pltpu

NUM_ATTR = 6               # num_attributes
OBJ_TYPES = 3              # object_types = 2 + 1
N_EMBD = 32                # synthetic hidden_size
N_HEADS = 2
N_LAYERS = 2
FFN = 64
WP_HEAD = 64               # wp_head output width
GRU_HIDDEN = WP_HEAD + 1   # 65 (torch GRUCell hidden size)
GRU_PAD = 128              # lane-dense padded hidden size
PRED_LEN = 4               # config_all['training']['pred_len']

_VMEM = pl.BlockSpec(memory_space=pltpu.MemorySpace.VMEM)


# ----------------------------- slab layouts -------------------------------- #

def _layout(entries):
    """Row layout for a packed (rows, width) param slab; every block 8-aligned."""
    lay, r = {}, 0
    for name, nrows, ncols in entries:
        lay[name] = (r, nrows, ncols)
        r += -(-nrows // 8) * 8
    return lay, r


_P_ENTRIES = (
    [('tok_w', NUM_ATTR, N_EMBD),
     ('tok_b', 1, N_EMBD),
     ('obj_emb', OBJ_TYPES, N_EMBD),
     ('cls_row', 1, N_EMBD),
     ('eos_row', 1, N_EMBD),
     ('onehot_lh', 1, GRU_PAD),
     ('offset', 1, GRU_PAD)]
    + [e for l in range(N_LAYERS) for e in [
        (f'wqkv{l}', N_EMBD, 3 * N_EMBD),
        (f'bqkv{l}', 1, 3 * N_EMBD),
        (f'wo{l}', N_EMBD, N_EMBD),
        (f'bo{l}', 1, N_EMBD),
        (f'g1{l}', 1, N_EMBD),
        (f'be1{l}', 1, N_EMBD),
        (f'w1{l}', N_EMBD, FFN),
        (f'b1{l}', 1, FFN),
        (f'w2{l}', FFN, N_EMBD),
        (f'b2{l}', 1, N_EMBD),
        (f'g2{l}', 1, N_EMBD),
        (f'be2{l}', 1, N_EMBD)]]
    + [('wp_head_w', N_EMBD, GRU_PAD),
       ('wp_head_b', 1, GRU_PAD)]
)
P_LAYOUT, P_ROWS = _layout(_P_ENTRIES)        # (544, 128) slab

_G_ENTRIES = [
    ('whh_plus', GRU_PAD, 4 * GRU_PAD),       # [whh (128,384) | ow_pad (128,128)]
    ('bhh_plus', 1, 4 * GRU_PAD),             # [bhh | ob_pad]
    ('wih_x', 2, 3 * GRU_PAD),                # x_wp input rows (gates stacked)
    ('wih_t', 2, 3 * GRU_PAD),                # target-point input rows
    ('bih', 1, 3 * GRU_PAD),
]
G_LAYOUT, G_ROWS = _layout(_G_ENTRIES)        # (160, 512) slab
G_WIDTH = 4 * GRU_PAD


# ----------------------------- fused kernel -------------------------------- #

def _layer_norm(x, gamma, beta, eps=1e-5):
    mean = jnp.mean(x, axis=-1, keepdims=True)
    var = jnp.mean((x - mean) ** 2, axis=-1, keepdims=True)
    return (x - mean) * jax.lax.rsqrt(var + eps) * gamma + beta


def hflm_kernel(acts_ref, p_ref, g_ref, out_ref, *, o_in):
    """Whole HFLM forward: embed -> 2x encoder layer -> GRU waypoint decoder."""

    def P(name, rlo=None, rhi=None):            # static slab slice (free view)
        r, nr, nc = P_LAYOUT[name]
        if rlo is None:
            return p_ref[r:r + nr, 0:nc]
        return p_ref[r + rlo:r + rhi, 0:nc]

    def G(name):
        r, nr, nc = G_LAYOUT[name]
        return g_ref[r:r + nr, 0:nc]

    # --- token + object-type embedding (obj/cls/eos embeddings precomputed) --
    t = acts_ref[0:o_in, 0:1]                    # (O_in, 1) type column
    data = acts_ref[0:o_in, 1:NUM_ATTR + 1]      # (O_in, 6)
    tp = acts_ref[o_in:o_in + 1, 0:2]            # (1, 2) target point
    lh = acts_ref[o_in:o_in + 1, 2:3]            # (1, 1) light hazard

    tok = jnp.dot(data, P('tok_w'),
                  preferred_element_type=jnp.float32) + P('tok_b')      # (O_in, D)
    obj = P('obj_emb')                                                   # (3, D)
    # NOTE: types are exact small integers stored as float32 -> exact compare ok.
    car = (t == 1.0).astype(jnp.float32)
    route = (t == 2.0).astype(jnp.float32)
    other = (1.0 - car) * (1.0 - route)
    # masks partition the tokens, so sum_i (tok + obj_i)*m_i == tok + sum_i obj_i*m_i
    body = tok + car * obj[0:1, :] + route * obj[1:2, :] + other * obj[2:3, :]
    h = jnp.concatenate([P('cls_row'), body, P('eos_row')], axis=0)      # (O, D)

    # --- transformer encoder (post-LN, GELU FFN), layers unrolled -------------
    hd = N_EMBD // N_HEADS
    scale = 1.0 / float(hd) ** 0.5
    for l in range(N_LAYERS):
        x = h
        qkv = jnp.dot(x, P(f'wqkv{l}'),
                      preferred_element_type=jnp.float32) + P(f'bqkv{l}')  # (O, 3D)
        attn = None
        for head in range(N_HEADS):
            lo, hi = head * hd, (head + 1) * hd
            qs = qkv[:, lo:hi]
            ks = qkv[:, N_EMBD + lo:N_EMBD + hi]
            vs = qkv[:, 2 * N_EMBD + lo:2 * N_EMBD + hi]
            # contract last dims of both operands -> no ks.T materialization.
            s = jax.lax.dot_general(qs, ks, (((1,), (1,)), ((), ())),
                                    preferred_element_type=jnp.float32) * scale
            s = s - jnp.max(s, axis=-1, keepdims=True)
            p = jnp.exp(s)
            p = p * pl.reciprocal(jnp.sum(p, axis=-1, keepdims=True), approx=True)
            ctx = jnp.dot(p, vs, preferred_element_type=jnp.float32)      # (O, hd)
            part = jnp.dot(ctx, P(f'wo{l}', lo, hi),
                           preferred_element_type=jnp.float32)            # (O, D)
            attn = part if attn is None else attn + part
        attn = attn + P(f'bo{l}')

        h1 = _layer_norm(x + attn, P(f'g1{l}'), P(f'be1{l}'))
        ff = jnp.dot(h1, P(f'w1{l}'),
                     preferred_element_type=jnp.float32) + P(f'b1{l}')
        ff = jax.nn.gelu(ff, approximate=True)
        ff = jnp.dot(ff, P(f'w2{l}'),
                     preferred_element_type=jnp.float32) + P(f'b2{l}')
        h = _layer_norm(h1 + ff, P(f'g2{l}'), P(f'be2{l}'))

    # --- waypoint decoder: wp_head + GRUCell (wp_output fused into whh) -------
    cls = h[0:1, :]                                                       # (1, D)
    # wp_head weight zero-padded to 128 cols; light_hazard goes in lane 64
    # (torch: z = cat((wp_head(x), light_hazard), 1)); lanes 65..127 stay zero.
    zhead = jnp.dot(cls, P('wp_head_w'),
                    preferred_element_type=jnp.float32) + P('wp_head_b')  # (1, 128)
    hstate = zhead + lh * P('onehot_lh')

    wih_x = G('wih_x')                                                    # (2, 384)
    # target-point gate contribution is constant across timesteps -> hoisted,
    # and computed with VPU broadcast-FMAs (no K=2 matmul).
    wih_t = G('wih_t')
    xi_tp = tp[:, 0:1] * wih_t[0:1, :] + tp[:, 1:2] * wih_t[1:2, :] + G('bih')
    offset = P('offset')[:, 0:2]                                          # [1.3, 0]

    Gp = GRU_PAD
    x_wp = jnp.zeros((1, 2), jnp.float32)
    wps = []
    # One fused (1,128)x(128,512) matmul per step gives gate pre-activations for
    # this step AND dx of the previous step's hidden state (shifted by one).
    for step in range(PRED_LEN + 1):
        y = jnp.dot(hstate, G('whh_plus'),
                    preferred_element_type=jnp.float32) + G('bhh_plus')   # (1, 512)
        if step > 0:
            x_wp = x_wp + y[:, 3 * Gp:3 * Gp + 2]       # dx of previous hstate
            wps.append(x_wp - offset)                   # x coord offset -1.3
        if step == PRED_LEN:
            break
        xi = x_wp[:, 0:1] * wih_x[0:1, :] + x_wp[:, 1:2] * wih_x[1:2, :] + xi_tp
        hh = y[:, 0:3 * Gp]
        r_g = jax.nn.sigmoid(xi[:, 0:Gp] + hh[:, 0:Gp])
        z_g = jax.nn.sigmoid(xi[:, Gp:2 * Gp] + hh[:, Gp:2 * Gp])
        n_g = jnp.tanh(xi[:, 2 * Gp:3 * Gp] + r_g * hh[:, 2 * Gp:3 * Gp])
        hstate = (1.0 - z_g) * n_g + z_g * hstate       # padded lanes stay 0

    out_ref[...] = jnp.concatenate(wps, axis=0)         # single store (4, 2)


# ------------------------------- wrapper ----------------------------------- #

@jax.jit
def hflm_forward(params, idx, target_point, light_hazard):
    x_batched = jnp.concatenate(idx, axis=0)             # (1, O_in, 7)
    xt = x_batched[0].astype(jnp.float32)                # (O_in, 7)
    o_in = xt.shape[0]
    n_rows = max(8, -(-(o_in + 1) // 8) * 8)

    # one tiny activation slab: rows 0..O_in-1 = tokens, row O_in = [tp, lh, 0..]
    row_tp = jnp.concatenate(
        [target_point.astype(jnp.float32), light_hazard.astype(jnp.float32),
         jnp.zeros((1, 5), jnp.float32)], axis=1)                        # (1, 8)
    acts = jnp.concatenate(
        [jnp.pad(xt, ((0, 0), (0, 8 - (NUM_ATTR + 1)))),
         row_tp,
         jnp.zeros((n_rows - o_in - 1, 8), jnp.float32)], axis=0)        # (rows, 8)

    pred = pl.pallas_call(
        functools.partial(hflm_kernel, o_in=o_in),
        out_shape=jax.ShapeDtypeStruct((PRED_LEN, 2), jnp.float32),
        in_specs=[_VMEM, _VMEM, _VMEM],
        out_specs=_VMEM,
    )(acts, params['pslab'], params['gslab'])

    pred_wp = pred[None, :, :]                            # (1, PRED_LEN, 2)
    return None, None, pred_wp, None


# ------------------------------- params ------------------------------------ #

def init_params(key):
    keys = iter(jax.random.split(key, 64))

    def normal(shape, std=0.02):
        return std * jax.random.normal(next(keys), shape, jnp.float32)

    def put(slab, name, val, layout):
        r, nr, nc = layout[name]
        return slab.at[r:r + nr, 0:nc].set(val)

    # --- raw parameters (mirrors torch _init_weights semantics) ---------------
    cls_emb = jax.random.normal(next(keys), (1, NUM_ATTR + 1), jnp.float32)
    eos_emb = jax.random.normal(next(keys), (1, NUM_ATTR + 1), jnp.float32)
    tok_w = normal((NUM_ATTR, N_EMBD))
    tok_b = jnp.zeros((1, N_EMBD), jnp.float32)
    obj_tok = jax.random.normal(next(keys), (OBJ_TYPES, NUM_ATTR), jnp.float32)
    obj_w = normal((OBJ_TYPES, NUM_ATTR, N_EMBD))
    obj_emb = jnp.einsum('oa,oad->od', obj_tok, obj_w)    # obj_emb Linear bias = 0

    # cls/eos type column is a random normal -> never exactly 1.0/2.0, so the
    # torch masks route both rows to the "other" object embedding.  Their full
    # embedded rows are input-independent -> precompute once here.
    cls_row = cls_emb[:, 1:] @ tok_w + tok_b + obj_emb[2:3, :]
    eos_row = eos_emb[:, 1:] @ tok_w + tok_b + obj_emb[2:3, :]

    onehot_lh = jnp.zeros((1, GRU_PAD), jnp.float32).at[0, WP_HEAD].set(1.0)
    offset = jnp.zeros((1, GRU_PAD), jnp.float32).at[0, 0].set(1.3)

    pslab = jnp.zeros((P_ROWS, 128), jnp.float32)
    pslab = put(pslab, 'tok_w', tok_w, P_LAYOUT)
    pslab = put(pslab, 'tok_b', tok_b, P_LAYOUT)
    pslab = put(pslab, 'obj_emb', obj_emb, P_LAYOUT)
    pslab = put(pslab, 'cls_row', cls_row, P_LAYOUT)
    pslab = put(pslab, 'eos_row', eos_row, P_LAYOUT)
    pslab = put(pslab, 'onehot_lh', onehot_lh, P_LAYOUT)
    pslab = put(pslab, 'offset', offset, P_LAYOUT)

    # Encoder layers: QKV fused into one (D, 3D) weight per layer.
    for l in range(N_LAYERS):
        wq, wk, wv = (normal((N_EMBD, N_EMBD)) for _ in range(3))
        pslab = put(pslab, f'wqkv{l}', jnp.concatenate([wq, wk, wv], axis=1), P_LAYOUT)
        pslab = put(pslab, f'bqkv{l}', jnp.zeros((1, 3 * N_EMBD), jnp.float32), P_LAYOUT)
        pslab = put(pslab, f'wo{l}', normal((N_EMBD, N_EMBD)), P_LAYOUT)
        pslab = put(pslab, f'bo{l}', jnp.zeros((1, N_EMBD), jnp.float32), P_LAYOUT)
        pslab = put(pslab, f'g1{l}', jnp.ones((1, N_EMBD), jnp.float32), P_LAYOUT)
        pslab = put(pslab, f'be1{l}', jnp.zeros((1, N_EMBD), jnp.float32), P_LAYOUT)
        pslab = put(pslab, f'w1{l}', normal((N_EMBD, FFN)), P_LAYOUT)
        pslab = put(pslab, f'b1{l}', jnp.zeros((1, FFN), jnp.float32), P_LAYOUT)
        pslab = put(pslab, f'w2{l}', normal((FFN, N_EMBD)), P_LAYOUT)
        pslab = put(pslab, f'b2{l}', jnp.zeros((1, N_EMBD), jnp.float32), P_LAYOUT)
        pslab = put(pslab, f'g2{l}', jnp.ones((1, N_EMBD), jnp.float32), P_LAYOUT)
        pslab = put(pslab, f'be2{l}', jnp.zeros((1, N_EMBD), jnp.float32), P_LAYOUT)

    # wp_head: (D, 64) zero-padded to (D, 128); light_hazard slots in at lane 64.
    wph = normal((N_EMBD, WP_HEAD))
    pslab = put(pslab, 'wp_head_w',
                jnp.pad(wph, ((0, 0), (0, GRU_PAD - WP_HEAD))), P_LAYOUT)
    pslab = put(pslab, 'wp_head_b', jnp.zeros((1, GRU_PAD), jnp.float32), P_LAYOUT)

    # --- GRUCell weights, torch gate order (r, z, n), hidden padded 65 -> 128 --
    # Zero-padding invariant keeps lanes 65..127 inert through every step.
    # TODO(synk): torch GRUCell default init is U(+-1/sqrt(65)); synthetic
    # 0.1*normal kept here (config-only model, no checkpoint to match).
    pad_h = GRU_PAD - GRU_HIDDEN
    wih_raw = 0.1 * jax.random.normal(next(keys), (3, 4, GRU_HIDDEN), jnp.float32)
    whh_raw = 0.1 * jax.random.normal(next(keys), (3, GRU_HIDDEN, GRU_HIDDEN),
                                      jnp.float32)
    wih_pad = jnp.pad(wih_raw, ((0, 0), (0, 0), (0, pad_h)))           # (3, 4, 128)
    whh_pad = jnp.pad(whh_raw, ((0, 0), (0, pad_h), (0, pad_h)))       # (3,128,128)
    wih_stk = jnp.concatenate([wih_pad[0], wih_pad[1], wih_pad[2]], axis=1)  # (4,384)
    whh = jnp.concatenate([whh_pad[0], whh_pad[1], whh_pad[2]], axis=1)      # (128,384)

    # wp_output folded into the hidden matmul: whh_plus = [whh | ow_pad].
    wout = normal((GRU_HIDDEN, 2))
    ow_pad = jnp.pad(jnp.pad(wout, ((0, pad_h), (0, 0))), ((0, 0), (0, GRU_PAD - 2)))
    ob_pad = jnp.zeros((1, GRU_PAD), jnp.float32)                      # wp_output bias 0
    whh_plus = jnp.concatenate([whh, ow_pad], axis=1)                  # (128, 512)
    bhh_plus = jnp.concatenate(
        [jnp.zeros((1, 3 * GRU_PAD), jnp.float32), ob_pad], axis=1)    # (1, 512)

    gslab = jnp.zeros((G_ROWS, G_WIDTH), jnp.float32)
    gslab = put(gslab, 'whh_plus', whh_plus, G_LAYOUT)
    gslab = put(gslab, 'bhh_plus', bhh_plus, G_LAYOUT)
    gslab = put(gslab, 'wih_x', wih_stk[0:2, :], G_LAYOUT)
    gslab = put(gslab, 'wih_t', wih_stk[2:4, :], G_LAYOUT)
    gslab = put(gslab, 'bih', jnp.zeros((1, 3 * GRU_PAD), jnp.float32), G_LAYOUT)

    return {'pslab': pslab, 'gslab': gslab}


# ------------------------------- main --------------------------------------- #

if __name__ == "__main__":
    key = jax.random.PRNGKey(0)
    pkey, dkey = jax.random.split(key)
    params = init_params(pkey)

    O_IN = 6  # objects before cls/eos -> seq length 8
    k1, k2, k3 = jax.random.split(dkey, 3)
    obj_types = jnp.array([1., 1., 2., 2., 0., 0.],
                          jnp.float32).reshape(1, O_IN, 1)
    obj_attrs = jax.random.normal(k1, (1, O_IN, NUM_ATTR), jnp.float32)
    idx = [jnp.concatenate([obj_types, obj_attrs], axis=-1)]  # list, like torch
    target_point = jax.random.normal(k2, (1, 2), jnp.float32)
    light_hazard = (jax.random.uniform(k3, (1, 1)) > 0.5).astype(jnp.float32)

    _, _, pred_wp, _ = hflm_forward(params, idx, target_point, light_hazard)
    pred_wp = jax.block_until_ready(pred_wp)
    assert pred_wp.shape == (1, PRED_LEN, 2)
    assert pred_wp.dtype == jnp.float32
    print("KERNEL_OK")
</pallas_src>

<mosaic_0001>
module attributes {stable_mosaic.version = 11 : i64} {
  func.func @hflm_kernel(%arg0: memref<8x8xf32, #tpu.memory_space<vmem>>, %arg1: memref<544x128xf32, #tpu.memory_space<vmem>>, %arg2: memref<160x512xf32, #tpu.memory_space<vmem>>, %arg3: memref<4x2xf32, #tpu.memory_space<vmem>>) attributes {dimension_semantics = [], scalar_prefetch = 0 : i64, scratch_operands = 0 : i64, tpu.core_type = #tpu.core_type<tc>} {
    %c0 = arith.constant 0 : index
    %c0_0 = arith.constant 0 : index
    %0 = vector.load %arg0[%c0, %c0_0] : memref<8x8xf32, #tpu.memory_space<vmem>>, vector<6x1xf32>
    %c0_1 = arith.constant 0 : index
    %c1 = arith.constant 1 : index
    %1 = vector.load %arg0[%c0_1, %c1] : memref<8x8xf32, #tpu.memory_space<vmem>>, vector<6x6xf32>
    %c6 = arith.constant 6 : index
    %c0_2 = arith.constant 0 : index
    %2 = vector.load %arg0[%c6, %c0_2] : memref<8x8xf32, #tpu.memory_space<vmem>>, vector<1x2xf32>
    %c6_3 = arith.constant 6 : index
    %c2 = arith.constant 2 : index
    %3 = vector.load %arg0[%c6_3, %c2] : memref<8x8xf32, #tpu.memory_space<vmem>>, vector<1x1xf32>
    %c0_4 = arith.constant 0 : index
    %c0_5 = arith.constant 0 : index
    %4 = vector.load %arg1[%c0_4, %c0_5] : memref<544x128xf32, #tpu.memory_space<vmem>>, vector<6x32xf32>
    %cst = arith.constant dense<0.000000e+00> : vector<6x32xf32>
    %5 = tpu.matmul %1, %4, %cst {dimension_numbers = #tpu.dot_dimension_numbers<[1], [0], [0], [1], [0, 0, 1, 1], [], []>} : vector<6x6xf32>, vector<6x32xf32>, vector<6x32xf32> -> vector<6x32xf32>
    %c8 = arith.constant 8 : index
    %c0_6 = arith.constant 0 : index
    %6 = vector.load %arg1[%c8, %c0_6] : memref<544x128xf32, #tpu.memory_space<vmem>>, vector<1x32xf32>
    %7 = vector.broadcast %6 : vector<1x32xf32> to vector<6x32xf32>
    %8 = arith.addf %5, %7 : vector<6x32xf32>
    %c16 = arith.constant 16 : index
    %c0_7 = arith.constant 0 : index
    %9 = vector.load %arg1[%c16, %c0_7] : memref<544x128xf32, #tpu.memory_space<vmem>>, vector<3x32xf32>
    %cst_8 = arith.constant 1.000000e+00 : f32
    %10 = vector.broadcast %cst_8 : f32 to vector<6x1xf32>
    %11 = arith.cmpf oeq, %0, %10 : vector<6x1xf32>
    %12 = arith.extui %11 : vector<6x1xi1> to vector<6x1xi32>
    %13 = arith.sitofp %12 : vector<6x1xi32> to vector<6x1xf32>
    %cst_9 = arith.constant 2.000000e+00 : f32
    %14 = vector.broadcast %cst_9 : f32 to vector<6x1xf32>
    %15 = arith.cmpf oeq, %0, %14 : vector<6x1xf32>
    %16 = arith.extui %15 : vector<6x1xi1> to vector<6x1xi32>
    %17 = arith.sitofp %16 : vector<6x1xi32> to vector<6x1xf32>
    %cst_10 = arith.constant 1.000000e+00 : f32
    %18 = vector.broadcast %cst_10 : f32 to vector<6x1xf32>
    %19 = arith.subf %18, %13 : vector<6x1xf32>
    %cst_11 = arith.constant 1.000000e+00 : f32
    %20 = vector.broadcast %cst_11 : f32 to vector<6x1xf32>
    %21 = arith.subf %20, %17 : vector<6x1xf32>
    %22 = arith.mulf %19, %21 : vector<6x1xf32>
    %23 = vector.extract_strided_slice %9 {offsets = [0, 0], sizes = [1, 32], strides = [1, 1]} : vector<3x32xf32> to vector<1x32xf32>
    %24 = vector.broadcast %13 : vector<6x1xf32> to vector<6x32xf32>
    %25 = vector.broadcast %23 : vector<1x32xf32> to vector<6x32xf32>
    %26 = arith.mulf %24, %25 : vector<6x32xf32>
    %27 = arith.addf %8, %26 : vector<6x32xf32>
    %28 = vector.extract_strided_slice %9 {offsets = [1, 0], sizes = [1, 32], strides = [1, 1]} : vector<3x32xf32> to vector<1x32xf32>
    %29 = vector.broadcast %17 : vector<6x1xf32> to vector<6x32xf32>
    %30 = vector.broadcast %28 : vector<1x32xf32> to vector<6x32xf32>
    %31 = arith.mulf %29, %30 : vector<6x32xf32>
    %32 = arith.addf %27, %31 : vector<6x32xf32>
    %33 = vector.extract_strided_slice %9 {offsets = [2, 0], sizes = [1, 32], strides = [1, 1]} : vector<3x32xf32> to vector<1x32xf32>
    %34 = vector.broadcast %22 : vector<6x1xf32> to vector<6x32xf32>
    %35 = vector.broadcast %33 : vector<1x32xf32> to vector<6x32xf32>
    %36 = arith.mulf %34, %35 : vector<6x32xf32>
    %37 = arith.addf %32, %36 : vector<6x32xf32>
    %c24 = arith.constant 24 : index
    %c0_12 = arith.constant 0 : index
    %38 = vector.load %arg1[%c24, %c0_12] : memref<544x128xf32, #tpu.memory_space<vmem>>, vector<1x32xf32>
    %c32 = arith.constant 32 : index
    %c0_13 = arith.constant 0 : index
    %39 = vector.load %arg1[%c32, %c0_13] : memref<544x128xf32, #tpu.memory_space<vmem>>, vector<1x32xf32>
    %40 = tpu.concatenate %38, %37, %39 in 0 : vector<1x32xf32>, vector<6x32xf32>, vector<1x32xf32> -> vector<8x32xf32>
    %c56 = arith.constant 56 : index
    %c0_14 = arith.constant 0 : index
    %41 = vector.load %arg1[%c56, %c0_14] : memref<544x128xf32, #tpu.memory_space<vmem>>, vector<32x96xf32>
    %cst_15 = arith.constant dense<0.000000e+00> : vector<8x96xf32>
    %42 = tpu.matmul %40, %41, %cst_15 {dimension_numbers = #tpu.dot_dimension_numbers<[1], [0], [0], [1], [0, 0, 1, 1], [], []>} : vector<8x32xf32>, vector<32x96xf32>, vector<8x96xf32> -> vector<8x96xf32>
    %c88 = arith.constant 88 : index
    %c0_16 = arith.constant 0 : index
    %43 = vector.load %arg1[%c88, %c0_16] : memref<544x128xf32, #tpu.memory_space<vmem>>, vector<1x96xf32>
    %44 = vector.broadcast %43 : vector<1x96xf32> to vector<8x96xf32>
    %45 = arith.addf %42, %44 : vector<8x96xf32>
    %46 = vector.extract_strided_slice %45 {offsets = [0, 0], sizes = [8, 16], strides = [1, 1]} : vector<8x96xf32> to vector<8x16xf32>
    %47 = vector.extract_strided_slice %45 {offsets = [0, 32], sizes = [8, 16], strides = [1, 1]} : vector<8x96xf32> to vector<8x16xf32>
    %48 = vector.extract_strided_slice %45 {offsets = [0, 64], sizes = [8, 16], strides = [1, 1]} : vector<8x96xf32> to vector<8x16xf32>
    %cst_17 = arith.constant dense<0.000000e+00> : vector<8x8xf32>
    %49 = tpu.matmul %46, %47, %cst_17 {dimension_numbers = #tpu.dot_dimension_numbers<[1], [1], [0], [0], [0, 0, 1, 0], [], []>} : vector<8x16xf32>, vector<8x16xf32>, vector<8x8xf32> -> vector<8x8xf32>
    %cst_18 = arith.constant 2.500000e-01 : f32
    %50 = vector.broadcast %cst_18 : f32 to vector<8x8xf32>
    %51 = arith.mulf %49, %50 : vector<8x8xf32>
    %cst_19 = arith.constant dense<0xFF800000> : vector<8xf32>
    %52 = vector.multi_reduction <maximumf>, %51, %cst_19 [1] : vector<8x8xf32> to vector<8xf32>
    %53 = vector.shape_cast %52 : vector<8xf32> to vector<8x1xf32>
    %54 = vector.broadcast %53 : vector<8x1xf32> to vector<8x8xf32>
    %55 = arith.subf %51, %54 : vector<8x8xf32>
    %56 = math.exp %55 : vector<8x8xf32>
    %cst_20 = arith.constant dense<0.000000e+00> : vector<8xf32>
    %57 = vector.multi_reduction <add>, %56, %cst_20 [1] : vector<8x8xf32> to vector<8xf32>
    %58 = vector.shape_cast %57 : vector<8xf32> to vector<8x1xf32>
    %59 = tpu.reciprocal %58 {approx = true} : vector<8x1xf32> -> vector<8x1xf32>
    %60 = vector.broadcast %59 : vector<8x1xf32> to vector<8x8xf32>
    %61 = arith.mulf %56, %60 : vector<8x8xf32>
    %cst_21 = arith.constant dense<0.000000e+00> : vector<8x16xf32>
    %62 = tpu.matmul %61, %48, %cst_21 {dimension_numbers = #tpu.dot_dimension_numbers<[1], [0], [0], [1], [0, 0, 1, 1], [], []>} : vector<8x8xf32>, vector<8x16xf32>, vector<8x16xf32> -> vector<8x16xf32>
    %c96 = arith.constant 96 : index
    %c0_22 = arith.constant 0 : index
    %63 = vector.load %arg1[%c96, %c0_22] : memref<544x128xf32, #tpu.memory_space<vmem>>, vector<16x32xf32>
    %cst_23 = arith.constant dense<0.000000e+00> : vector<8x32xf32>
    %64 = tpu.matmul %62, %63, %cst_23 {dimension_numbers = #tpu.dot_dimension_numbers<[1], [0], [0], [1], [0, 0, 1, 1], [], []>} : vector<8x16xf32>, vector<16x32xf32>, vector<8x32xf32> -> vector<8x32xf32>
    %65 = vector.extract_strided_slice %45 {offsets = [0, 16], sizes = [8, 16], strides = [1, 1]} : vector<8x96xf32> to vector<8x16xf32>
    %66 = vector.extract_strided_slice %45 {offsets = [0, 48], sizes = [8, 16], strides = [1, 1]} : vector<8x96xf32> to vector<8x16xf32>
    %67 = vector.extract_strided_slice %45 {offsets = [0, 80], sizes = [8, 16], strides = [1, 1]} : vector<8x96xf32> to vector<8x16xf32>
    %cst_24 = arith.constant dense<0.000000e+00> : vector<8x8xf32>
    %68 = tpu.matmul %65, %66, %cst_24 {dimension_numbers = #tpu.dot_dimension_numbers<[1], [1], [0], [0], [0, 0, 1, 0], [], []>} : vector<8x16xf32>, vector<8x16xf32>, vector<8x8xf32> -> vector<8x8xf32>
    %cst_25 = arith.constant 2.500000e-01 : f32
    %69 = vector.broadcast %cst_25 : f32 to vector<8x8xf32>
    %70 = arith.mulf %68, %69 : vector<8x8xf32>
    %cst_26 = arith.constant dense<0xFF800000> : vector<8xf32>
    %71 = vector.multi_reduction <maximumf>, %70, %cst_26 [1] : vector<8x8xf32> to vector<8xf32>
    %72 = vector.shape_cast %71 : vector<8xf32> to vector<8x1xf32>
    %73 = vector.broadcast %72 : vector<8x1xf32> to vector<8x8xf32>
    %74 = arith.subf %70, %73 : vector<8x8xf32>
    %75 = math.exp %74 : vector<8x8xf32>
    %cst_27 = arith.constant dense<0.000000e+00> : vector<8xf32>
    %76 = vector.multi_reduction <add>, %75, %cst_27 [1] : vector<8x8xf32> to vector<8xf32>
    %77 = vector.shape_cast %76 : vector<8xf32> to vector<8x1xf32>
    %78 = tpu.reciprocal %77 {approx = true} : vector<8x1xf32> -> vector<8x1xf32>
    %79 = vector.broadcast %78 : vector<8x1xf32> to vector<8x8xf32>
    %80 = arith.mulf %75, %79 : vector<8x8xf32>
    %cst_28 = arith.constant dense<0.000000e+00> : vector<8x16xf32>
    %81 = tpu.matmul %80, %67, %cst_28 {dimension_numbers = #tpu.dot_dimension_numbers<[1], [0], [0], [1], [0, 0, 1, 1], [], []>} : vector<8x8xf32>, vector<8x16xf32>, vector<8x16xf32> -> vector<8x16xf32>
    %c112 = arith.constant 112 : index
    %c0_29 = arith.constant 0 : index
    %82 = vector.load %arg1[%c112, %c0_29] : memref<544x128xf32, #tpu.memory_space<vmem>>, vector<16x32xf32>
    %cst_30 = arith.constant dense<0.000000e+00> : vector<8x32xf32>
    %83 = tpu.matmul %81, %82, %cst_30 {dimension_numbers = #tpu.dot_dimension_numbers<[1], [0], [0], [1], [0, 0, 1, 1], [], []>} : vector<8x16xf32>, vector<16x32xf32>, vector<8x32xf32> -> vector<8x32xf32>
    %84 = arith.addf %64, %83 : vector<8x32xf32>
    %c128 = arith.constant 128 : index
    %c0_31 = arith.constant 0 : index
    %85 = vector.load %arg1[%c128, %c0_31] : memref<544x128xf32, #tpu.memory_space<vmem>>, vector<1x32xf32>
    %86 = vector.broadcast %85 : vector<1x32xf32> to vector<8x32xf32>
    %87 = arith.addf %84, %86 : vector<8x32xf32>
    %88 = arith.addf %40, %87 : vector<8x32xf32>
    %c136 = arith.constant 136 : index
    %c0_32 = arith.constant 0 : index
    %89 = vector.load %arg1[%c136, %c0_32] : memref<544x128xf32, #tpu.memory_space<vmem>>, vector<1x32xf32>
    %c144 = arith.constant 144 : index
    %c0_33 = arith.constant 0 : index
    %90 = vector.load %arg1[%c144, %c0_33] : memref<544x128xf32, #tpu.memory_space<vmem>>, vector<1x32xf32>
    %cst_34 = arith.constant dense<0.000000e+00> : vector<8xf32>
    %91 = vector.multi_reduction <add>, %88, %cst_34 [1] : vector<8x32xf32> to vector<8xf32>
    %92 = vector.shape_cast %91 : vector<8xf32> to vector<8x1xf32>
    %cst_35 = arith.constant 3.200000e+01 : f32
    %93 = vector.broadcast %cst_35 : f32 to vector<8x1xf32>
    %94 = arith.divf %92, %93 : vector<8x1xf32>
    %95 = vector.broadcast %94 : vector<8x1xf32> to vector<8x32xf32>
    %96 = arith.subf %88, %95 : vector<8x32xf32>
    %97 = arith.mulf %96, %96 : vector<8x32xf32>
    %cst_36 = arith.constant dense<0.000000e+00> : vector<8xf32>
    %98 = vector.multi_reduction <add>, %97, %cst_36 [1] : vector<8x32xf32> to vector<8xf32>
    %99 = vector.shape_cast %98 : vector<8xf32> to vector<8x1xf32>
    %cst_37 = arith.constant 3.200000e+01 : f32
    %100 = vector.broadcast %cst_37 : f32 to vector<8x1xf32>
    %101 = arith.divf %99, %100 : vector<8x1xf32>
    %102 = vector.broadcast %94 : vector<8x1xf32> to vector<8x32xf32>
    %103 = arith.subf %88, %102 : vector<8x32xf32>
    %cst_38 = arith.constant 9.99999974E-6 : f32
    %104 = vector.broadcast %cst_38 : f32 to vector<8x1xf32>
    %105 = arith.addf %101, %104 : vector<8x1xf32>
    %106 = math.rsqrt %105 : vector<8x1xf32>
    %107 = vector.broadcast %106 : vector<8x1xf32> to vector<8x32xf32>
    %108 = arith.mulf %103, %107 : vector<8x32xf32>
    %109 = vector.broadcast %89 : vector<1x32xf32> to vector<8x32xf32>
    %110 = arith.mulf %108, %109 : vector<8x32xf32>
    %111 = vector.broadcast %90 : vector<1x32xf32> to vector<8x32xf32>
    %112 = arith.addf %110, %111 : vector<8x32xf32>
    %c152 = arith.constant 152 : index
    %c0_39 = arith.constant 0 : index
    %113 = vector.load %arg1[%c152, %c0_39] : memref<544x128xf32, #tpu.memory_space<vmem>>, vector<32x64xf32>
    %cst_40 = arith.constant dense<0.000000e+00> : vector<8x64xf32>
    %114 = tpu.matmul %112, %113, %cst_40 {dimension_numbers = #tpu.dot_dimension_numbers<[1], [0], [0], [1], [0, 0, 1, 1], [], []>} : vector<8x32xf32>, vector<32x64xf32>, vector<8x64xf32> -> vector<8x64xf32>
    %c184 = arith.constant 184 : index
    %c0_41 = arith.constant 0 : index
    %115 = vector.load %arg1[%c184, %c0_41] : memref<544x128xf32, #tpu.memory_space<vmem>>, vector<1x64xf32>
    %116 = vector.broadcast %115 : vector<1x64xf32> to vector<8x64xf32>
    %117 = arith.addf %114, %116 : vector<8x64xf32>
    %118 = arith.mulf %117, %117 : vector<8x64xf32>
    %119 = arith.mulf %117, %118 : vector<8x64xf32>
    %cst_42 = arith.constant 4.471500e-02 : f32
    %120 = vector.broadcast %cst_42 : f32 to vector<8x64xf32>
    %121 = arith.mulf %120, %119 : vector<8x64xf32>
    %122 = arith.addf %117, %121 : vector<8x64xf32>
    %cst_43 = arith.constant 0.797884583 : f32
    %123 = vector.broadcast %cst_43 : f32 to vector<8x64xf32>
    %124 = arith.mulf %123, %122 : vector<8x64xf32>
    %125 = math.tanh %124 : vector<8x64xf32>
    %cst_44 = arith.constant 1.000000e+00 : f32
    %126 = vector.broadcast %cst_44 : f32 to vector<8x64xf32>
    %127 = arith.addf %126, %125 : vector<8x64xf32>
    %cst_45 = arith.constant 5.000000e-01 : f32
    %128 = vector.broadcast %cst_45 : f32 to vector<8x64xf32>
    %129 = arith.mulf %128, %127 : vector<8x64xf32>
    %130 = arith.mulf %117, %129 : vector<8x64xf32>
    %c192 = arith.constant 192 : index
    %c0_46 = arith.constant 0 : index
    %131 = vector.load %arg1[%c192, %c0_46] : memref<544x128xf32, #tpu.memory_space<vmem>>, vector<64x32xf32>
    %cst_47 = arith.constant dense<0.000000e+00> : vector<8x32xf32>
    %132 = tpu.matmul %130, %131, %cst_47 {dimension_numbers = #tpu.dot_dimension_numbers<[1], [0], [0], [1], [0, 0, 1, 1], [], []>} : vector<8x64xf32>, vector<64x32xf32>, vector<8x32xf32> -> vector<8x32xf32>
    %c256 = arith.constant 256 : index
    %c0_48 = arith.constant 0 : index
    %133 = vector.load %arg1[%c256, %c0_48] : memref<544x128xf32, #tpu.memory_space<vmem>>, vector<1x32xf32>
    %134 = vector.broadcast %133 : vector<1x32xf32> to vector<8x32xf32>
    %135 = arith.addf %132, %134 : vector<8x32xf32>
    %136 = arith.addf %112, %135 : vector<8x32xf32>
    %c264 = arith.constant 264 : index
    %c0_49 = arith.constant 0 : index
    %137 = vector.load %arg1[%c264, %c0_49] : memref<544x128xf32, #tpu.memory_space<vmem>>, vector<1x32xf32>
    %c272 = arith.constant 272 : index
    %c0_50 = arith.constant 0 : index
    %138 = vector.load %arg1[%c272, %c0_50] : memref<544x128xf32, #tpu.memory_space<vmem>>, vector<1x32xf32>
    %cst_51 = arith.constant dense<0.000000e+00> : vector<8xf32>
    %139 = vector.multi_reduction <add>, %136, %cst_51 [1] : vector<8x32xf32> to vector<8xf32>
    %140 = vector.shape_cast %139 : vector<8xf32> to vector<8x1xf32>
    %cst_52 = arith.constant 3.200000e+01 : f32
    %141 = vector.broadcast %cst_52 : f32 to vector<8x1xf32>
    %142 = arith.divf %140, %141 : vector<8x1xf32>
    %143 = vector.broadcast %142 : vector<8x1xf32> to vector<8x32xf32>
    %144 = arith.subf %136, %143 : vector<8x32xf32>
    %145 = arith.mulf %144, %144 : vector<8x32xf32>
    %cst_53 = arith.constant dense<0.000000e+00> : vector<8xf32>
    %146 = vector.multi_reduction <add>, %145, %cst_53 [1] : vector<8x32xf32> to vector<8xf32>
    %147 = vector.shape_cast %146 : vector<8xf32> to vector<8x1xf32>
    %cst_54 = arith.constant 3.200000e+01 : f32
    %148 = vector.broadcast %cst_54 : f32 to vector<8x1xf32>
    %149 = arith.divf %147, %148 : vector<8x1xf32>
    %150 = vector.broadcast %142 : vector<8x1xf32> to vector<8x32xf32>
    %151 = arith.subf %136, %150 : vector<8x32xf32>
    %cst_55 = arith.constant 9.99999974E-6 : f32
    %152 = vector.broadcast %cst_55 : f32 to vector<8x1xf32>
    %153 = arith.addf %149, %152 : vector<8x1xf32>
    %154 = math.rsqrt %153 : vector<8x1xf32>
    %155 = vector.broadcast %154 : vector<8x1xf32> to vector<8x32xf32>
    %156 = arith.mulf %151, %155 : vector<8x32xf32>
    %157 = vector.broadcast %137 : vector<1x32xf32> to vector<8x32xf32>
    %158 = arith.mulf %156, %157 : vector<8x32xf32>
    %159 = vector.broadcast %138 : vector<1x32xf32> to vector<8x32xf32>
    %160 = arith.addf %158, %159 : vector<8x32xf32>
    %c280 = arith.constant 280 : index
    %c0_56 = arith.constant 0 : index
    %161 = vector.load %arg1[%c280, %c0_56] : memref<544x128xf32, #tpu.memory_space<vmem>>, vector<32x96xf32>
    %cst_57 = arith.constant dense<0.000000e+00> : vector<8x96xf32>
    %162 = tpu.matmul %160, %161, %cst_57 {dimension_numbers = #tpu.dot_dimension_numbers<[1], [0], [0], [1], [0, 0, 1, 1], [], []>} : vector<8x32xf32>, vector<32x96xf32>, vector<8x96xf32> -> vector<8x96xf32>
    %c312 = arith.constant 312 : index
    %c0_58 = arith.constant 0 : index
    %163 = vector.load %arg1[%c312, %c0_58] : memref<544x128xf32, #tpu.memory_space<vmem>>, vector<1x96xf32>
    %164 = vector.broadcast %163 : vector<1x96xf32> to vector<8x96xf32>
    %165 = arith.addf %162, %164 : vector<8x96xf32>
    %166 = vector.extract_strided_slice %165 {offsets = [0, 0], sizes = [8, 16], strides = [1, 1]} : vector<8x96xf32> to vector<8x16xf32>
    %167 = vector.extract_strided_slice %165 {offsets = [0, 32], sizes = [8, 16], strides = [1, 1]} : vector<8x96xf32> to vector<8x16xf32>
    %168 = vector.extract_strided_slice %165 {offsets = [0, 64], sizes = [8, 16], strides = [1, 1]} : vector<8x96xf32> to vector<8x16xf32>
    %cst_59 = arith.constant dense<0.000000e+00> : vector<8x8xf32>
    %169 = tpu.matmul %166, %167, %cst_59 {dimension_numbers = #tpu.dot_dimension_numbers<[1], [1], [0], [0], [0, 0, 1, 0], [], []>} : vector<8x16xf32>, vector<8x16xf32>, vector<8x8xf32> -> vector<8x8xf32>
    %cst_60 = arith.constant 2.500000e-01 : f32
    %170 = vector.broadcast %cst_60 : f32 to vector<8x8xf32>
    %171 = arith.mulf %169, %170 : vector<8x8xf32>
    %cst_61 = arith.constant dense<0xFF800000> : vector<8xf32>
    %172 = vector.multi_reduction <maximumf>, %171, %cst_61 [1] : vector<8x8xf32> to vector<8xf32>
    %173 = vector.shape_cast %172 : vector<8xf32> to vector<8x1xf32>
    %174 = vector.broadcast %173 : vector<8x1xf32> to vector<8x8xf32>
    %175 = arith.subf %171, %174 : vector<8x8xf32>
    %176 = math.exp %175 : vector<8x8xf32>
    %cst_62 = arith.constant dense<0.000000e+00> : vector<8xf32>
    %177 = vector.multi_reduction <add>, %176, %cst_62 [1] : vector<8x8xf32> to vector<8xf32>
    %178 = vector.shape_cast %177 : vector<8xf32> to vector<8x1xf32>
    %179 = tpu.reciprocal %178 {approx = true} : vector<8x1xf32> -> vector<8x1xf32>
    %180 = vector.broadcast %179 : vector<8x1xf32> to vector<8x8xf32>
    %181 = arith.mulf %176, %180 : vector<8x8xf32>
    %cst_63 = arith.constant dense<0.000000e+00> : vector<8x16xf32>
    %182 = tpu.matmul %181, %168, %cst_63 {dimension_numbers = #tpu.dot_dimension_numbers<[1], [0], [0], [1], [0, 0, 1, 1], [], []>} : vector<8x8xf32>, vector<8x16xf32>, vector<8x16xf32> -> vector<8x16xf32>
    %c320 = arith.constant 320 : index
    %c0_64 = arith.constant 0 : index
    %183 = vector.load %arg1[%c320, %c0_64] : memref<544x128xf32, #tpu.memory_space<vmem>>, vector<16x32xf32>
    %cst_65 = arith.constant dense<0.000000e+00> : vector<8x32xf32>
    %184 = tpu.matmul %182, %183, %cst_65 {dimension_numbers = #tpu.dot_dimension_numbers<[1], [0], [0], [1], [0, 0, 1, 1], [], []>} : vector<8x16xf32>, vector<16x32xf32>, vector<8x32xf32> -> vector<8x32xf32>
    %185 = vector.extract_strided_slice %165 {offsets = [0, 16], sizes = [8, 16], strides = [1, 1]} : vector<8x96xf32> to vector<8x16xf32>
    %186 = vector.extract_strided_slice %165 {offsets = [0, 48], sizes = [8, 16], strides = [1, 1]} : vector<8x96xf32> to vector<8x16xf32>
    %187 = vector.extract_strided_slice %165 {offsets = [0, 80], sizes = [8, 16], strides = [1, 1]} : vector<8x96xf32> to vector<8x16xf32>
    %cst_66 = arith.constant dense<0.000000e+00> : vector<8x8xf32>
    %188 = tpu.matmul %185, %186, %cst_66 {dimension_numbers = #tpu.dot_dimension_numbers<[1], [1], [0], [0], [0, 0, 1, 0], [], []>} : vector<8x16xf32>, vector<8x16xf32>, vector<8x8xf32> -> vector<8x8xf32>
    %cst_67 = arith.constant 2.500000e-01 : f32
    %189 = vector.broadcast %cst_67 : f32 to vector<8x8xf32>
    %190 = arith.mulf %188, %189 : vector<8x8xf32>
    %cst_68 = arith.constant dense<0xFF800000> : vector<8xf32>
    %191 = vector.multi_reduction <maximumf>, %190, %cst_68 [1] : vector<8x8xf32> to vector<8xf32>
    %192 = vector.shape_cast %191 : vector<8xf32> to vector<8x1xf32>
    %193 = vector.broadcast %192 : vector<8x1xf32> to vector<8x8xf32>
    %194 = arith.subf %190, %193 : vector<8x8xf32>
    %195 = math.exp %194 : vector<8x8xf32>
    %cst_69 = arith.constant dense<0.000000e+00> : vector<8xf32>
    %196 = vector.multi_reduction <add>, %195, %cst_69 [1] : vector<8x8xf32> to vector<8xf32>
    %197 = vector.shape_cast %196 : vector<8xf32> to vector<8x1xf32>
    %198 = tpu.reciprocal %197 {approx = true} : vector<8x1xf32> -> vector<8x1xf32>
    %199 = vector.broadcast %198 : vector<8x1xf32> to vector<8x8xf32>
    %200 = arith.mulf %195, %199 : vector<8x8xf32>
    %cst_70 = arith.constant dense<0.000000e+00> : vector<8x16xf32>
    %201 = tpu.matmul %200, %187, %cst_70 {dimension_numbers = #tpu.dot_dimension_numbers<[1], [0], [0], [1], [0, 0, 1, 1], [], []>} : vector<8x8xf32>, vector<8x16xf32>, vector<8x16xf32> -> vector<8x16xf32>
    %c336 = arith.constant 336 : index
    %c0_71 = arith.constant 0 : index
    %202 = vector.load %arg1[%c336, %c0_71] : memref<544x128xf32, #tpu.memory_space<vmem>>, vector<16x32xf32>
    %cst_72 = arith.constant dense<0.000000e+00> : vector<8x32xf32>
    %203 = tpu.matmul %201, %202, %cst_72 {dimension_numbers = #tpu.dot_dimension_numbers<[1], [0], [0], [1], [0, 0, 1, 1], [], []>} : vector<8x16xf32>, vector<16x32xf32>, vector<8x32xf32> -> vector<8x32xf32>
    %204 = arith.addf %184, %203 : vector<8x32xf32>
    %c352 = arith.constant 352 : index
    %c0_73 = arith.constant 0 : index
    %205 = vector.load %arg1[%c352, %c0_73] : memref<544x128xf32, #tpu.memory_space<vmem>>, vector<1x32xf32>
    %206 = vector.broadcast %205 : vector<1x32xf32> to vector<8x32xf32>
    %207 = arith.addf %204, %206 : vector<8x32xf32>
    %208 = arith.addf %160, %207 : vector<8x32xf32>
    %c360 = arith.constant 360 : index
    %c0_74 = arith.constant 0 : index
    %209 = vector.load %arg1[%c360, %c0_74] : memref<544x128xf32, #tpu.memory_space<vmem>>, vector<1x32xf32>
    %c368 = arith.constant 368 : index
    %c0_75 = arith.constant 0 : index
    %210 = vector.load %arg1[%c368, %c0_75] : memref<544x128xf32, #tpu.memory_space<vmem>>, vector<1x32xf32>
    %cst_76 = arith.constant dense<0.000000e+00> : vector<8xf32>
    %211 = vector.multi_reduction <add>, %208, %cst_76 [1] : vector<8x32xf32> to vector<8xf32>
    %212 = vector.shape_cast %211 : vector<8xf32> to vector<8x1xf32>
    %cst_77 = arith.constant 3.200000e+01 : f32
    %213 = vector.broadcast %cst_77 : f32 to vector<8x1xf32>
    %214 = arith.divf %212, %213 : vector<8x1xf32>
    %215 = vector.broadcast %214 : vector<8x1xf32> to vector<8x32xf32>
    %216 = arith.subf %208, %215 : vector<8x32xf32>
    %217 = arith.mulf %216, %216 : vector<8x32xf32>
    %cst_78 = arith.constant dense<0.000000e+00> : vector<8xf32>
    %218 = vector.multi_reduction <add>, %217, %cst_78 [1] : vector<8x32xf32> to vector<8xf32>
    %219 = vector.shape_cast %218 : vector<8xf32> to vector<8x1xf32>
    %cst_79 = arith.constant 3.200000e+01 : f32
    %220 = vector.broadcast %cst_79 : f32 to vector<8x1xf32>
    %221 = arith.divf %219, %220 : vector<8x1xf32>
    %222 = vector.broadcast %214 : vector<8x1xf32> to vector<8x32xf32>
    %223 = arith.subf %208, %222 : vector<8x32xf32>
    %cst_80 = arith.constant 9.99999974E-6 : f32
    %224 = vector.broadcast %cst_80 : f32 to vector<8x1xf32>
    %225 = arith.addf %221, %224 : vector<8x1xf32>
    %226 = math.rsqrt %225 : vector<8x1xf32>
    %227 = vector.broadcast %226 : vector<8x1xf32> to vector<8x32xf32>
    %228 = arith.mulf %223, %227 : vector<8x32xf32>
    %229 = vector.broadcast %209 : vector<1x32xf32> to vector<8x32xf32>
    %230 = arith.mulf %228, %229 : vector<8x32xf32>
    %231 = vector.broadcast %210 : vector<1x32xf32> to vector<8x32xf32>
    %232 = arith.addf %230, %231 : vector<8x32xf32>
    %c376 = arith.constant 376 : index
    %c0_81 = arith.constant 0 : index
    %233 = vector.load %arg1[%c376, %c0_81] : memref<544x128xf32, #tpu.memory_space<vmem>>, vector<32x64xf32>
    %cst_82 = arith.constant dense<0.000000e+00> : vector<8x64xf32>
    %234 = tpu.matmul %232, %233, %cst_82 {dimension_numbers = #tpu.dot_dimension_numbers<[1], [0], [0], [1], [0, 0, 1, 1], [], []>} : vector<8x32xf32>, vector<32x64xf32>, vector<8x64xf32> -> vector<8x64xf32>
    %c408 = arith.constant 408 : index
    %c0_83 = arith.constant 0 : index
    %235 = vector.load %arg1[%c408, %c0_83] : memref<544x128xf32, #tpu.memory_space<vmem>>, vector<1x64xf32>
    %236 = vector.broadcast %235 : vector<1x64xf32> to vector<8x64xf32>
    %237 = arith.addf %234, %236 : vector<8x64xf32>
    %238 = arith.mulf %237, %237 : vector<8x64xf32>
    %239 = arith.mulf %237, %238 : vector<8x64xf32>
    %cst_84 = arith.constant 4.471500e-02 : f32
    %240 = vector.broadcast %cst_84 : f32 to vector<8x64xf32>
    %241 = arith.mulf %240, %239 : vector<8x64xf32>
    %242 = arith.addf %237, %241 : vector<8x64xf32>
    %cst_85 = arith.constant 0.797884583 : f32
    %243 = vector.broadcast %cst_85 : f32 to vector<8x64xf32>
    %244 = arith.mulf %243, %242 : vector<8x64xf32>
    %245 = math.tanh %244 : vector<8x64xf32>
    %cst_86 = arith.constant 1.000000e+00 : f32
    %246 = vector.broadcast %cst_86 : f32 to vector<8x64xf32>
    %247 = arith.addf %246, %245 : vector<8x64xf32>
    %cst_87 = arith.constant 5.000000e-01 : f32
    %248 = vector.broadcast %cst_87 : f32 to vector<8x64xf32>
    %249 = arith.mulf %248, %247 : vector<8x64xf32>
    %250 = arith.mulf %237, %249 : vector<8x64xf32>
    %c416 = arith.constant 416 : index
    %c0_88 = arith.constant 0 : index
    %251 = vector.load %arg1[%c416, %c0_88] : memref<544x128xf32, #tpu.memory_space<vmem>>, vector<64x32xf32>
    %cst_89 = arith.constant dense<0.000000e+00> : vector<8x32xf32>
    %252 = tpu.matmul %250, %251, %cst_89 {dimension_numbers = #tpu.dot_dimension_numbers<[1], [0], [0], [1], [0, 0, 1, 1], [], []>} : vector<8x64xf32>, vector<64x32xf32>, vector<8x32xf32> -> vector<8x32xf32>
    %c480 = arith.constant 480 : index
    %c0_90 = arith.constant 0 : index
    %253 = vector.load %arg1[%c480, %c0_90] : memref<544x128xf32, #tpu.memory_space<vmem>>, vector<1x32xf32>
    %254 = vector.broadcast %253 : vector<1x32xf32> to vector<8x32xf32>
    %255 = arith.addf %252, %254 : vector<8x32xf32>
    %256 = arith.addf %232, %255 : vector<8x32xf32>
    %c488 = arith.constant 488 : index
    %c0_91 = arith.constant 0 : index
    %257 = vector.load %arg1[%c488, %c0_91] : memref<544x128xf32, #tpu.memory_space<vmem>>, vector<1x32xf32>
    %c496 = arith.constant 496 : index
    %c0_92 = arith.constant 0 : index
    %258 = vector.load %arg1[%c496, %c0_92] : memref<544x128xf32, #tpu.memory_space<vmem>>, vector<1x32xf32>
    %cst_93 = arith.constant dense<0.000000e+00> : vector<8xf32>
    %259 = vector.multi_reduction <add>, %256, %cst_93 [1] : vector<8x32xf32> to vector<8xf32>
    %260 = vector.shape_cast %259 : vector<8xf32> to vector<8x1xf32>
    %cst_94 = arith.constant 3.200000e+01 : f32
    %261 = vector.broadcast %cst_94 : f32 to vector<8x1xf32>
    %262 = arith.divf %260, %261 : vector<8x1xf32>
    %263 = vector.broadcast %262 : vector<8x1xf32> to vector<8x32xf32>
    %264 = arith.subf %256, %263 : vector<8x32xf32>
    %265 = arith.mulf %264, %264 : vector<8x32xf32>
    %cst_95 = arith.constant dense<0.000000e+00> : vector<8xf32>
    %266 = vector.multi_reduction <add>, %265, %cst_95 [1] : vector<8x32xf32> to vector<8xf32>
    %267 = vector.shape_cast %266 : vector<8xf32> to vector<8x1xf32>
    %cst_96 = arith.constant 3.200000e+01 : f32
    %268 = vector.broadcast %cst_96 : f32 to vector<8x1xf32>
    %269 = arith.divf %267, %268 : vector<8x1xf32>
    %270 = vector.broadcast %262 : vector<8x1xf32> to vector<8x32xf32>
    %271 = arith.subf %256, %270 : vector<8x32xf32>
    %cst_97 = arith.constant 9.99999974E-6 : f32
    %272 = vector.broadcast %cst_97 : f32 to vector<8x1xf32>
    %273 = arith.addf %269, %272 : vector<8x1xf32>
    %274 = math.rsqrt %273 : vector<8x1xf32>
    %275 = vector.broadcast %274 : vector<8x1xf32> to vector<8x32xf32>
    %276 = arith.mulf %271, %275 : vector<8x32xf32>
    %277 = vector.broadcast %257 : vector<1x32xf32> to vector<8x32xf32>
    %278 = arith.mulf %276, %277 : vector<8x32xf32>
    %279 = vector.broadcast %258 : vector<1x32xf32> to vector<8x32xf32>
    %280 = arith.addf %278, %279 : vector<8x32xf32>
    %281 = vector.extract_strided_slice %280 {offsets = [0, 0], sizes = [1, 32], strides = [1, 1]} : vector<8x32xf32> to vector<1x32xf32>
    %c504 = arith.constant 504 : index
    %c0_98 = arith.constant 0 : index
    %282 = vector.load %arg1[%c504, %c0_98] : memref<544x128xf32, #tpu.memory_space<vmem>>, vector<32x128xf32>
    %cst_99 = arith.constant dense<0.000000e+00> : vector<1x128xf32>
    %283 = tpu.matmul %281, %282, %cst_99 {dimension_numbers = #tpu.dot_dimension_numbers<[1], [0], [0], [1], [0, 0, 1, 1], [], []>} : vector<1x32xf32>, vector<32x128xf32>, vector<1x128xf32> -> vector<1x128xf32>
    %c536 = arith.constant 536 : index
    %c0_100 = arith.constant 0 : index
    %284 = vector.load %arg1[%c536, %c0_100] : memref<544x128xf32, #tpu.memory_space<vmem>>, vector<1x128xf32>
    %285 = arith.addf %283, %284 : vector<1x128xf32>
    %c40 = arith.constant 40 : index
    %c0_101 = arith.constant 0 : index
    %286 = vector.load %arg1[%c40, %c0_101] : memref<544x128xf32, #tpu.memory_space<vmem>>, vector<1x128xf32>
    %287 = vector.broadcast %3 : vector<1x1xf32> to vector<1x128xf32>
    %288 = arith.mulf %287, %286 : vector<1x128xf32>
    %289 = arith.addf %285, %288 : vector<1x128xf32>
    %c136_102 = arith.constant 136 : index
    %c0_103 = arith.constant 0 : index
    %290 = vector.load %arg2[%c136_102, %c0_103] : memref<160x512xf32, #tpu.memory_space<vmem>>, vector<2x384xf32>
    %c144_104 = arith.constant 144 : index
    %c0_105 = arith.constant 0 : index
    %291 = vector.load %arg2[%c144_104, %c0_105] : memref<160x512xf32, #tpu.memory_space<vmem>>, vector<2x384xf32>
    %292 = vector.extract_strided_slice %2 {offsets = [0, 0], sizes = [1, 1], strides = [1, 1]} : vector<1x2xf32> to vector<1x1xf32>
    %293 = vector.extract_strided_slice %291 {offsets = [0, 0], sizes = [1, 384], strides = [1, 1]} : vector<2x384xf32> to vector<1x384xf32>
    %294 = vector.broadcast %292 : vector<1x1xf32> to vector<1x384xf32>
    %295 = arith.mulf %294, %293 : vector<1x384xf32>
    %296 = vector.extract_strided_slice %2 {offsets = [0, 1], sizes = [1, 1], strides = [1, 1]} : vector<1x2xf32> to vector<1x1xf32>
    %297 = vector.extract_strided_slice %291 {offsets = [1, 0], sizes = [1, 384], strides = [1, 1]} : vector<2x384xf32> to vector<1x384xf32>
    %298 = vector.broadcast %296 : vector<1x1xf32> to vector<1x384xf32>
    %299 = arith.mulf %298, %297 : vector<1x384xf32>
    %300 = arith.addf %295, %299 : vector<1x384xf32>
    %c152_106 = arith.constant 152 : index
    %c0_107 = arith.constant 0 : index
    %301 = vector.load %arg2[%c152_106, %c0_107] : memref<160x512xf32, #tpu.memory_space<vmem>>, vector<1x384xf32>
    %302 = arith.addf %300, %301 : vector<1x384xf32>
    %c48 = arith.constant 48 : index
    %c0_108 = arith.constant 0 : index
    %303 = vector.load %arg1[%c48, %c0_108] : memref<544x128xf32, #tpu.memory_space<vmem>>, vector<1x128xf32>
    %304 = vector.extract_strided_slice %303 {offsets = [0, 0], sizes = [1, 2], strides = [1, 1]} : vector<1x128xf32> to vector<1x2xf32>
    %cst_109 = arith.constant 0.000000e+00 : f32
    %305 = vector.broadcast %cst_109 : f32 to vector<1x2xf32>
    %c0_110 = arith.constant 0 : index
    %c0_111 = arith.constant 0 : index
    %306 = vector.load %arg2[%c0_110, %c0_111] : memref<160x512xf32, #tpu.memory_space<vmem>>, vector<128x512xf32>
    %cst_112 = arith.constant dense<0.000000e+00> : vector<1x512xf32>
    %307 = tpu.matmul %289, %306, %cst_112 {dimension_numbers = #tpu.dot_dimension_numbers<[1], [0], [0], [1], [0, 0, 1, 1], [], []>} : vector<1x128xf32>, vector<128x512xf32>, vector<1x512xf32> -> vector<1x512xf32>
    %c128_113 = arith.constant 128 : index
    %c0_114 = arith.constant 0 : index
    %308 = vector.load %arg2[%c128_113, %c0_114] : memref<160x512xf32, #tpu.memory_space<vmem>>, vector<1x512xf32>
    %309 = arith.addf %307, %308 : vector<1x512xf32>
    %310 = vector.extract_strided_slice %305 {offsets = [0, 0], sizes = [1, 1], strides = [1, 1]} : vector<1x2xf32> to vector<1x1xf32>
    %311 = vector.extract_strided_slice %290 {offsets = [0, 0], sizes = [1, 384], strides = [1, 1]} : vector<2x384xf32> to vector<1x384xf32>
    %312 = vector.broadcast %310 : vector<1x1xf32> to vector<1x384xf32>
    %313 = arith.mulf %312, %311 : vector<1x384xf32>
    %314 = vector.extract_strided_slice %305 {offsets = [0, 1], sizes = [1, 1], strides = [1, 1]} : vector<1x2xf32> to vector<1x1xf32>
    %315 = vector.extract_strided_slice %290 {offsets = [1, 0], sizes = [1, 384], strides = [1, 1]} : vector<2x384xf32> to vector<1x384xf32>
    %316 = vector.broadcast %314 : vector<1x1xf32> to vector<1x384xf32>
    %317 = arith.mulf %316, %315 : vector<1x384xf32>
    %318 = arith.addf %313, %317 : vector<1x384xf32>
    %319 = arith.addf %318, %302 : vector<1x384xf32>
    %320 = vector.extract_strided_slice %309 {offsets = [0, 0], sizes = [1, 384], strides = [1, 1]} : vector<1x512xf32> to vector<1x384xf32>
    %321 = vector.extract_strided_slice %319 {offsets = [0, 0], sizes = [1, 128], strides = [1, 1]} : vector<1x384xf32> to vector<1x128xf32>
    %322 = vector.extract_strided_slice %320 {offsets = [0, 0], sizes = [1, 128], strides = [1, 1]} : vector<1x384xf32> to vector<1x128xf32>
    %323 = arith.addf %321, %322 : vector<1x128xf32>
    %324 = arith.negf %323 : vector<1x128xf32>
    %325 = math.exp %324 : vector<1x128xf32>
    %cst_115 = arith.constant 1.000000e+00 : f32
    %326 = vector.broadcast %cst_115 : f32 to vector<1x128xf32>
    %327 = arith.addf %326, %325 : vector<1x128xf32>
    %328 = arith.divf %326, %327 : vector<1x128xf32>
    %329 = vector.extract_strided_slice %319 {offsets = [0, 128], sizes = [1, 128], strides = [1, 1]} : vector<1x384xf32> to vector<1x128xf32>
    %330 = vector.extract_strided_slice %320 {offsets = [0, 128], sizes = [1, 128], strides = [1, 1]} : vector<1x384xf32> to vector<1x128xf32>
    %331 = arith.addf %329, %330 : vector<1x128xf32>
    %332 = arith.negf %331 : vector<1x128xf32>
    %333 = math.exp %332 : vector<1x128xf32>
    %cst_116 = arith.constant 1.000000e+00 : f32
    %334 = vector.broadcast %cst_116 : f32 to vector<1x128xf32>
    %335 = arith.addf %334, %333 : vector<1x128xf32>
    %336 = arith.divf %334, %335 : vector<1x128xf32>
    %337 = vector.extract_strided_slice %319 {offsets = [0, 256], sizes = [1, 128], strides = [1, 1]} : vector<1x384xf32> to vector<1x128xf32>
    %338 = vector.extract_strided_slice %320 {offsets = [0, 256], sizes = [1, 128], strides = [1, 1]} : vector<1x384xf32> to vector<1x128xf32>
    %339 = arith.mulf %328, %338 : vector<1x128xf32>
    %340 = arith.addf %337, %339 : vector<1x128xf32>
    %341 = math.tanh %340 : vector<1x128xf32>
    %cst_117 = arith.constant 1.000000e+00 : f32
    %342 = vector.broadcast %cst_117 : f32 to vector<1x128xf32>
    %343 = arith.subf %342, %336 : vector<1x128xf32>
    %344 = arith.mulf %343, %341 : vector<1x128xf32>
    %345 = arith.mulf %336, %289 : vector<1x128xf32>
    %346 = arith.addf %344, %345 : vector<1x128xf32>
    %c0_118 = arith.constant 0 : index
    %c0_119 = arith.constant 0 : index
    %347 = vector.load %arg2[%c0_118, %c0_119] : memref<160x512xf32, #tpu.memory_space<vmem>>, vector<128x512xf32>
    %cst_120 = arith.constant dense<0.000000e+00> : vector<1x512xf32>
    %348 = tpu.matmul %346, %347, %cst_120 {dimension_numbers = #tpu.dot_dimension_numbers<[1], [0], [0], [1], [0, 0, 1, 1], [], []>} : vector<1x128xf32>, vector<128x512xf32>, vector<1x512xf32> -> vector<1x512xf32>
    %c128_121 = arith.constant 128 : index
    %c0_122 = arith.constant 0 : index
    %349 = vector.load %arg2[%c128_121, %c0_122] : memref<160x512xf32, #tpu.memory_space<vmem>>, vector<1x512xf32>
    %350 = arith.addf %348, %349 : vector<1x512xf32>
    %351 = vector.extract_strided_slice %350 {offsets = [0, 384], sizes = [1, 2], strides = [1, 1]} : vector<1x512xf32> to vector<1x2xf32>
    %352 = arith.addf %305, %351 : vector<1x2xf32>
    %353 = arith.subf %352, %304 : vector<1x2xf32>
    %354 = vector.extract_strided_slice %352 {offsets = [0, 0], sizes = [1, 1], strides = [1, 1]} : vector<1x2xf32> to vector<1x1xf32>
    %355 = vector.extract_strided_slice %290 {offsets = [0, 0], sizes = [1, 384], strides = [1, 1]} : vector<2x384xf32> to vector<1x384xf32>
    %356 = vector.broadcast %354 : vector<1x1xf32> to vector<1x384xf32>
    %357 = arith.mulf %356, %355 : vector<1x384xf32>
    %358 = vector.extract_strided_slice %352 {offsets = [0, 1], sizes = [1, 1], strides = [1, 1]} : vector<1x2xf32> to vector<1x1xf32>
    %359 = vector.extract_strided_slice %290 {offsets = [1, 0], sizes = [1, 384], strides = [1, 1]} : vector<2x384xf32> to vector<1x384xf32>
    %360 = vector.broadcast %358 : vector<1x1xf32> to vector<1x384xf32>
    %361 = arith.mulf %360, %359 : vector<1x384xf32>
    %362 = arith.addf %357, %361 : vector<1x384xf32>
    %363 = arith.addf %362, %302 : vector<1x384xf32>
    %364 = vector.extract_strided_slice %350 {offsets = [0, 0], sizes = [1, 384], strides = [1, 1]} : vector<1x512xf32> to vector<1x384xf32>
    %365 = vector.extract_strided_slice %363 {offsets = [0, 0], sizes = [1, 128], strides = [1, 1]} : vector<1x384xf32> to vector<1x128xf32>
    %366 = vector.extract_strided_slice %364 {offsets = [0, 0], sizes = [1, 128], strides = [1, 1]} : vector<1x384xf32> to vector<1x128xf32>
    %367 = arith.addf %365, %366 : vector<1x128xf32>
    %368 = arith.negf %367 : vector<1x128xf32>
    %369 = math.exp %368 : vector<1x128xf32>
    %cst_123 = arith.constant 1.000000e+00 : f32
    %370 = vector.broadcast %cst_123 : f32 to vector<1x128xf32>
    %371 = arith.addf %370, %369 : vector<1x128xf32>
    %372 = arith.divf %370, %371 : vector<1x128xf32>
    %373 = vector.extract_strided_slice %363 {offsets = [0, 128], sizes = [1, 128], strides = [1, 1]} : vector<1x384xf32> to vector<1x128xf32>
    %374 = vector.extract_strided_slice %364 {offsets = [0, 128], sizes = [1, 128], strides = [1, 1]} : vector<1x384xf32> to vector<1x128xf32>
    %375 = arith.addf %373, %374 : vector<1x128xf32>
    %376 = arith.negf %375 : vector<1x128xf32>
    %377 = math.exp %376 : vector<1x128xf32>
    %cst_124 = arith.constant 1.000000e+00 : f32
    %378 = vector.broadcast %cst_124 : f32 to vector<1x128xf32>
    %379 = arith.addf %378, %377 : vector<1x128xf32>
    %380 = arith.divf %378, %379 : vector<1x128xf32>
    %381 = vector.extract_strided_slice %363 {offsets = [0, 256], sizes = [1, 128], strides = [1, 1]} : vector<1x384xf32> to vector<1x128xf32>
    %382 = vector.extract_strided_slice %364 {offsets = [0, 256], sizes = [1, 128], strides = [1, 1]} : vector<1x384xf32> to vector<1x128xf32>
    %383 = arith.mulf %372, %382 : vector<1x128xf32>
    %384 = arith.addf %381, %383 : vector<1x128xf32>
    %385 = math.tanh %384 : vector<1x128xf32>
    %cst_125 = arith.constant 1.000000e+00 : f32
    %386 = vector.broadcast %cst_125 : f32 to vector<1x128xf32>
    %387 = arith.subf %386, %380 : vector<1x128xf32>
    %388 = arith.mulf %387, %385 : vector<1x128xf32>
    %389 = arith.mulf %380, %346 : vector<1x128xf32>
    %390 = arith.addf %388, %389 : vector<1x128xf32>
    %c0_126 = arith.constant 0 : index
    %c0_127 = arith.constant 0 : index
    %391 = vector.load %arg2[%c0_126, %c0_127] : memref<160x512xf32, #tpu.memory_space<vmem>>, vector<128x512xf32>
    %cst_128 = arith.constant dense<0.000000e+00> : vector<1x512xf32>
    %392 = tpu.matmul %390, %391, %cst_128 {dimension_numbers = #tpu.dot_dimension_numbers<[1], [0], [0], [1], [0, 0, 1, 1], [], []>} : vector<1x128xf32>, vector<128x512xf32>, vector<1x512xf32> -> vector<1x512xf32>
    %c128_129 = arith.constant 128 : index
    %c0_130 = arith.constant 0 : index
    %393 = vector.load %arg2[%c128_129, %c0_130] : memref<160x512xf32, #tpu.memory_space<vmem>>, vector<1x512xf32>
    %394 = arith.addf %392, %393 : vector<1x512xf32>
    %395 = vector.extract_strided_slice %394 {offsets = [0, 384], sizes = [1, 2], strides = [1, 1]} : vector<1x512xf32> to vector<1x2xf32>
    %396 = arith.addf %352, %395 : vector<1x2xf32>
    %397 = arith.subf %396, %304 : vector<1x2xf32>
    %398 = vector.extract_strided_slice %396 {offsets = [0, 0], sizes = [1, 1], strides = [1, 1]} : vector<1x2xf32> to vector<1x1xf32>
    %399 = vector.extract_strided_slice %290 {offsets = [0, 0], sizes = [1, 384], strides = [1, 1]} : vector<2x384xf32> to vector<1x384xf32>
    %400 = vector.broadcast %398 : vector<1x1xf32> to vector<1x384xf32>
    %401 = arith.mulf %400, %399 : vector<1x384xf32>
    %402 = vector.extract_strided_slice %396 {offsets = [0, 1], sizes = [1, 1], strides = [1, 1]} : vector<1x2xf32> to vector<1x1xf32>
    %403 = vector.extract_strided_slice %290 {offsets = [1, 0], sizes = [1, 384], strides = [1, 1]} : vector<2x384xf32> to vector<1x384xf32>
    %404 = vector.broadcast %402 : vector<1x1xf32> to vector<1x384xf32>
    %405 = arith.mulf %404, %403 : vector<1x384xf32>
    %406 = arith.addf %401, %405 : vector<1x384xf32>
    %407 = arith.addf %406, %302 : vector<1x384xf32>
    %408 = vector.extract_strided_slice %394 {offsets = [0, 0], sizes = [1, 384], strides = [1, 1]} : vector<1x512xf32> to vector<1x384xf32>
    %409 = vector.extract_strided_slice %407 {offsets = [0, 0], sizes = [1, 128], strides = [1, 1]} : vector<1x384xf32> to vector<1x128xf32>
    %410 = vector.extract_strided_slice %408 {offsets = [0, 0], sizes = [1, 128], strides = [1, 1]} : vector<1x384xf32> to vector<1x128xf32>
    %411 = arith.addf %409, %410 : vector<1x128xf32>
    %412 = arith.negf %411 : vector<1x128xf32>
    %413 = math.exp %412 : vector<1x128xf32>
    %cst_131 = arith.constant 1.000000e+00 : f32
    %414 = vector.broadcast %cst_131 : f32 to vector<1x128xf32>
    %415 = arith.addf %414, %413 : vector<1x128xf32>
    %416 = arith.divf %414, %415 : vector<1x128xf32>
    %417 = vector.extract_strided_slice %407 {offsets = [0, 128], sizes = [1, 128], strides = [1, 1]} : vector<1x384xf32> to vector<1x128xf32>
    %418 = vector.extract_strided_slice %408 {offsets = [0, 128], sizes = [1, 128], strides = [1, 1]} : vector<1x384xf32> to vector<1x128xf32>
    %419 = arith.addf %417, %418 : vector<1x128xf32>
    %420 = arith.negf %419 : vector<1x128xf32>
    %421 = math.exp %420 : vector<1x128xf32>
    %cst_132 = arith.constant 1.000000e+00 : f32
    %422 = vector.broadcast %cst_132 : f32 to vector<1x128xf32>
    %423 = arith.addf %422, %421 : vector<1x128xf32>
    %424 = arith.divf %422, %423 : vector<1x128xf32>
    %425 = vector.extract_strided_slice %407 {offsets = [0, 256], sizes = [1, 128], strides = [1, 1]} : vector<1x384xf32> to vector<1x128xf32>
    %426 = vector.extract_strided_slice %408 {offsets = [0, 256], sizes = [1, 128], strides = [1, 1]} : vector<1x384xf32> to vector<1x128xf32>
    %427 = arith.mulf %416, %426 : vector<1x128xf32>
    %428 = arith.addf %425, %427 : vector<1x128xf32>
    %429 = math.tanh %428 : vector<1x128xf32>
    %cst_133 = arith.constant 1.000000e+00 : f32
    %430 = vector.broadcast %cst_133 : f32 to vector<1x128xf32>
    %431 = arith.subf %430, %424 : vector<1x128xf32>
    %432 = arith.mulf %431, %429 : vector<1x128xf32>
    %433 = arith.mulf %424, %390 : vector<1x128xf32>
    %434 = arith.addf %432, %433 : vector<1x128xf32>
    %c0_134 = arith.constant 0 : index
    %c0_135 = arith.constant 0 : index
    %435 = vector.load %arg2[%c0_134, %c0_135] : memref<160x512xf32, #tpu.memory_space<vmem>>, vector<128x512xf32>
    %cst_136 = arith.constant dense<0.000000e+00> : vector<1x512xf32>
    %436 = tpu.matmul %434, %435, %cst_136 {dimension_numbers = #tpu.dot_dimension_numbers<[1], [0], [0], [1], [0, 0, 1, 1], [], []>} : vector<1x128xf32>, vector<128x512xf32>, vector<1x512xf32> -> vector<1x512xf32>
    %c128_137 = arith.constant 128 : index
    %c0_138 = arith.constant 0 : index
    %437 = vector.load %arg2[%c128_137, %c0_138] : memref<160x512xf32, #tpu.memory_space<vmem>>, vector<1x512xf32>
    %438 = arith.addf %436, %437 : vector<1x512xf32>
    %439 = vector.extract_strided_slice %438 {offsets = [0, 384], sizes = [1, 2], strides = [1, 1]} : vector<1x512xf32> to vector<1x2xf32>
    %440 = arith.addf %396, %439 : vector<1x2xf32>
    %441 = arith.subf %440, %304 : vector<1x2xf32>
    %442 = vector.extract_strided_slice %440 {offsets = [0, 0], sizes = [1, 1], strides = [1, 1]} : vector<1x2xf32> to vector<1x1xf32>
    %443 = vector.extract_strided_slice %290 {offsets = [0, 0], sizes = [1, 384], strides = [1, 1]} : vector<2x384xf32> to vector<1x384xf32>
    %444 = vector.broadcast %442 : vector<1x1xf32> to vector<1x384xf32>
    %445 = arith.mulf %444, %443 : vector<1x384xf32>
    %446 = vector.extract_strided_slice %440 {offsets = [0, 1], sizes = [1, 1], strides = [1, 1]} : vector<1x2xf32> to vector<1x1xf32>
    %447 = vector.extract_strided_slice %290 {offsets = [1, 0], sizes = [1, 384], strides = [1, 1]} : vector<2x384xf32> to vector<1x384xf32>
    %448 = vector.broadcast %446 : vector<1x1xf32> to vector<1x384xf32>
    %449 = arith.mulf %448, %447 : vector<1x384xf32>
    %450 = arith.addf %445, %449 : vector<1x384xf32>
    %451 = arith.addf %450, %302 : vector<1x384xf32>
    %452 = vector.extract_strided_slice %438 {offsets = [0, 0], sizes = [1, 384], strides = [1, 1]} : vector<1x512xf32> to vector<1x384xf32>
    %453 = vector.extract_strided_slice %451 {offsets = [0, 0], sizes = [1, 128], strides = [1, 1]} : vector<1x384xf32> to vector<1x128xf32>
    %454 = vector.extract_strided_slice %452 {offsets = [0, 0], sizes = [1, 128], strides = [1, 1]} : vector<1x384xf32> to vector<1x128xf32>
    %455 = arith.addf %453, %454 : vector<1x128xf32>
    %456 = arith.negf %455 : vector<1x128xf32>
    %457 = math.exp %456 : vector<1x128xf32>
    %cst_139 = arith.constant 1.000000e+00 : f32
    %458 = vector.broadcast %cst_139 : f32 to vector<1x128xf32>
    %459 = arith.addf %458, %457 : vector<1x128xf32>
    %460 = arith.divf %458, %459 : vector<1x128xf32>
    %461 = vector.extract_strided_slice %451 {offsets = [0, 128], sizes = [1, 128], strides = [1, 1]} : vector<1x384xf32> to vector<1x128xf32>
    %462 = vector.extract_strided_slice %452 {offsets = [0, 128], sizes = [1, 128], strides = [1, 1]} : vector<1x384xf32> to vector<1x128xf32>
    %463 = arith.addf %461, %462 : vector<1x128xf32>
    %464 = arith.negf %463 : vector<1x128xf32>
    %465 = math.exp %464 : vector<1x128xf32>
    %cst_140 = arith.constant 1.000000e+00 : f32
    %466 = vector.broadcast %cst_140 : f32 to vector<1x128xf32>
    %467 = arith.addf %466, %465 : vector<1x128xf32>
    %468 = arith.divf %466, %467 : vector<1x128xf32>
    %469 = vector.extract_strided_slice %451 {offsets = [0, 256], sizes = [1, 128], strides = [1, 1]} : vector<1x384xf32> to vector<1x128xf32>
    %470 = vector.extract_strided_slice %452 {offsets = [0, 256], sizes = [1, 128], strides = [1, 1]} : vector<1x384xf32> to vector<1x128xf32>
    %471 = arith.mulf %460, %470 : vector<1x128xf32>
    %472 = arith.addf %469, %471 : vector<1x128xf32>
    %473 = math.tanh %472 : vector<1x128xf32>
    %cst_141 = arith.constant 1.000000e+00 : f32
    %474 = vector.broadcast %cst_141 : f32 to vector<1x128xf32>
    %475 = arith.subf %474, %468 : vector<1x128xf32>
    %476 = arith.mulf %475, %473 : vector<1x128xf32>
    %477 = arith.mulf %468, %434 : vector<1x128xf32>
    %478 = arith.addf %476, %477 : vector<1x128xf32>
    %c0_142 = arith.constant 0 : index
    %c0_143 = arith.constant 0 : index
    %479 = vector.load %arg2[%c0_142, %c0_143] : memref<160x512xf32, #tpu.memory_space<vmem>>, vector<128x512xf32>
    %cst_144 = arith.constant dense<0.000000e+00> : vector<1x512xf32>
    %480 = tpu.matmul %478, %479, %cst_144 {dimension_numbers = #tpu.dot_dimension_numbers<[1], [0], [0], [1], [0, 0, 1, 1], [], []>} : vector<1x128xf32>, vector<128x512xf32>, vector<1x512xf32> -> vector<1x512xf32>
    %c128_145 = arith.constant 128 : index
    %c0_146 = arith.constant 0 : index
    %481 = vector.load %arg2[%c128_145, %c0_146] : memref<160x512xf32, #tpu.memory_space<vmem>>, vector<1x512xf32>
    %482 = arith.addf %480, %481 : vector<1x512xf32>
    %483 = vector.extract_strided_slice %482 {offsets = [0, 384], sizes = [1, 2], strides = [1, 1]} : vector<1x512xf32> to vector<1x2xf32>
    %484 = arith.addf %440, %483 : vector<1x2xf32>
    %485 = arith.subf %484, %304 : vector<1x2xf32>
    %486 = tpu.concatenate %353, %397, %441, %485 in 0 : vector<1x2xf32>, vector<1x2xf32>, vector<1x2xf32>, vector<1x2xf32> -> vector<4x2xf32>
    %c0_147 = arith.constant 0 : index
    %c0_148 = arith.constant 0 : index
    %487 = vector.load %arg3[%c0_147, %c0_148] : memref<4x2xf32, #tpu.memory_space<vmem>>, vector<4x2xf32>
    tpu.vector_store %arg3[%c0_147, %c0_148], %486 {strides = array<i32>} : memref<4x2xf32, #tpu.memory_space<vmem>>, vector<4x2xf32>,
    return
  }
}

</mosaic_0001>

<bundles_post_ra>
// kernel: hflm_forward.1
= control target key start
LH: loop header
LB: loop body
LE: loop exit
PB: predicated region body
PF: predicated region fallthrough
CT: control target
= control target key end

     0   :  { %8 = vsyncpa [#allocation3], 0  ;;  %s4068_s0 = inlined_call_operand.vmem [shape: f32[8,8], index: 0, kind: input, shape index: {}]   ;;  %s4069_s1 = inlined_call_operand.hbm [shape: f32[544,128], index: 1, kind: input, shape index: {}]   ;;  %s4070_s2 = inlined_call_operand.hbm [shape: f32[160,512], index: 2, kind: input, shape index: {}]   ;;  %s4071_s3 = inlined_call_operand.vmem [shape: f32[4,2], index: 3, kind: output, shape index: {}]  }
   0x1   :  { %9 = vsyncpa [#allocation5], 0  ;;  %s3301_s12 = smov [#allocation2]  }
   0x2   :  { %s17_s13 = sshll.u32 %s3301_s12, 4  ;;  %s18_s13 = int_to_ptr.vmem [resolvable:$true] %s17_s13 }
   0x3   :  { %s3265_s14 = scalar_lea.vmem %s18_s13, 8704  ;;  %p3270_p1 = scmp.lt.s32.totalorder %s18_s13, %s18_s13 }
   0x4   :  { %p3266_p0 = scmp.ne.s32.totalorder %s18_s13, %s3265_s14  ;;  %p3271_p2 = scmp.lt.s32.totalorder %s3265_s14, %s3265_s14 }
   0x6   :  { %p3272_p3 = por %p3271_p2, %p3270_p1 }
   0x8   :  { %p3273_p4 = pnand %p3272_p3, %p3266_p0 }
   0xa   :  { %3276 = shalt.err (!%p3273_p4)
}
   0xb   :  { %s3302_s15 = smov 128   ;;  %s3303_s16 = smov 8  }
   0xc   :  { %23 = dma.hbm_to_vmem [thread:$0]  %s4069_s1, 8704, %s18_s13, [#allocation3], %s3302_s15, %s3302_s15, %s3303_s16  }
   0xd   :  { %s3304_s19 = smov [#allocation4]  }
   0xe   :  { %s29_s20 = sshll.u32 %s3304_s19, 4  ;;  %s30_s20 = int_to_ptr.vmem [resolvable:$true] %s29_s20 }
   0xf   :  { %s3285_s21 = scalar_lea.vmem %s30_s20, 10240  ;;  %p3290_p6 = scmp.lt.s32.totalorder %s30_s20, %s30_s20 }
  0x10   :  { %p3286_p5 = scmp.ne.s32.totalorder %s30_s20, %s3285_s21  ;;  %p3291_p7 = scmp.lt.s32.totalorder %s3285_s21, %s3285_s21 }
  0x12   :  { %p3292_p8 = por %p3291_p7, %p3290_p6 }
  0x14   :  { %p3293_p9 = pnand %p3292_p8, %p3286_p5 }
  0x16   :  { %3296 = shalt.err (!%p3293_p9)
}
  0x17   :  { %s3305_s22 = smov 512   ;;  %s3306_s23 = smov 32  }
  0x18   :  { %35 = dma.hbm_to_vmem [thread:$0]  %s4070_s2, 10240, %s30_s20, [#allocation5], %s3305_s22, %s3305_s22, %s3306_s23  }
  0x19   :  { %3297 = dma.done.wait [#allocation3], 8704  }
  0x1a   :  { %3298 = vsyncadd [#allocation3], 4294958592 }
  0x1b   :  { %3299 = dma.done.wait [#allocation5], 10240  }
  0x1c   :  { %3300 = vsyncadd [#allocation5], 4294957056  ;;  %v4076_v0 = vmov 0.0   ;;  %vm3308_vm0 = vmmov 0   ;;  %v4072_v1 = vmov 0   ;;  %vm56_vm1 = vcmask 1045504  }
  0x1d   :  { %2979 = vmatprep.subr.mxu0 %v4076_v0  ;;  %2981 = vmatprep.mubr.msk.f32.mxu0 %vm3308_vm0, %v4076_v0  ;;  %v42_v2 = vld [vmem:[%s4068_s0] sm:$0x3f]  ;;  %s3310_s26 = smov 127   ;;  %vm53_vm4 = vcmask 48128   ;;  %v188_v10 = vld [vmem:[#allocation2 + $0x50] sm:$0xff]  ;;  %v187_v11 = vld [vmem:[#allocation2 + $0x48] sm:$0xff]  ;;  %v145_v14 = vlaneseq }
  0x1e   :  { %3163 = vset.pattern.permute.xlu1 %v4072_v1  ;;  %3162 = vset.pattern.permute.xlu0 %v4072_v1  ;;  %v44_v3 = vld [vmem:[#allocation2] sm:$0x3f]  ;;  %vm134_vm2 = vcmp.eq.f32.partialorder %v42_v2, 2.0  ;;  %vm131_vm3 = vcmp.eq.f32.partialorder %v42_v2, 1.0  ;;  %v185_v13 = vld [vmem:[#allocation2 + $0x38] sm:$0xff]  ;;  %vm181_vm5 = vcmask 1040384  }
  0x1f   :  { %3005 = vmatprep.subr.mxu1 %v4076_v0  ;;  %3007 = vmatprep.mubr.msk.f32.mxu1 %vm3308_vm0, %v4076_v0  ;;  %v2858_v4 = vsel %vm134_vm2, 1.0, %v4076_v0  ;;  %v2857_v5 = vsel %vm131_vm3, 1.0, %v4076_v0  ;;  %v186_v12 = vld [vmem:[#allocation2 + $0x40] sm:$0xff]  ;;  %v3364_v15 = vshrl.u32 %v145_v14, 7  ;;  %v130_v17 = vld [vmem:[#allocation2 + $0x10] sm:$0x7] }
  0x20   :  { %51 = vrot.lane.b32.xlu0 %v42_v2, %s3310_s26  ;;  %2980 = vmatpush3.msk.msra.mxu0 %vm56_vm1, %v44_v3  ;;  %v138_v6 = vsub.f32 1.0, %v2858_v4  ;;  %v137_v7 = vsub.f32 1.0, %v2857_v5  ;;  %v2854_v23 = vld [vmem:[#allocation2 + $0x8] ss:$0 sm:$0xff]  ;;  %v174_v35 = vld [vmem:[#allocation2 + $0x20] sm:$0x1] }
  0x21   :  { %2984 = vmatprep.subr.mxu0 %v4076_v0  ;;  %153 = vperm.xlu1 %3163, %v2858_v4   ;;  %4162 = vst [vmem:[#allocation8_spill] sm:$0xff] %v3364_v15  ;;  %v3367_v16 = vsub.s32 0, %v3364_v15  ;;  %v3370_v18 = vsub.s32 1, %v3364_v15  ;;  %v3374_v22 = vsub.s32 2, %v3364_v15  ;;  %v173_v37 = vld [vmem:[#allocation2 + $0x18] sm:$0x1] }
  0x22   :  { %v139_v8 = vmul.f32 %v138_v6, %v137_v7  ;;  %v179_v38 = vrot.slane %v174_v35, 1  ;;  %vm183_vm6 = vcmask 1046528   ;;  %vm194_vm7 = vcmask 261120   ;;  %v2859_v42 = vld [vmem:[#allocation2 + $0x58] ss:$0 sm:$0xff]  ;;  %s3311_s27 = smov 80  }
  0x23   :  { %4163 = vst [vmem:[#allocation9_spill] sm:$0xff] %v3367_v16  ;;  %4164 = vst [vmem:[#allocation10_spill] sm:$0xff] %v3370_v18  ;;  %v148_v19 = vrot.slane %v130_v17, %v3367_v16  ;;  %v159_v24 = vrot.slane %v130_v17, %v3370_v18  ;;  %v170_v28 = vrot.slane %v130_v17, %v3374_v22  ;;  %s3312_s28 = smov 96   ;;  %s3313_s29 = smov 112   ;;  %vm271_vm8 = vcmask 130048   ;;  %v435_v14 = vld [vmem:[#allocation2 + $0x60] sm:$0xff] }
  0x24   :  { %142 = vperm.xlu0 %3162, %v2857_v5   ;;  %4165 = vst [vmem:[#allocation11_spill] sm:$0xff] %v3374_v22  ;;  %vm347_vm9 = vcmask 64512   ;;  %s3314_s30 = smov 64   ;;  %s3315_s4 = smov 48   ;;  %v604_v17 = vld [vmem:[#allocation2 + $0x78] sm:$0xff]  ;;  %vm888_vm10 = vcmask 523264  }
  0x25   :  { %164 = vperm.xlu1 %3163, %v139_v8   ;;  %v3709_v15 = vld [vmem:[#allocation4 + $0x8] sm:$0xff]  ;;  %v3711_v22 = vld [vmem:[#allocation4 + $0x18] sm:$0xff]  ;;  %v3713_v18 = vld [vmem:[#allocation4] sm:$0xff]  ;;  %vm2842_vm11 = vcmask 1041408   ;;  %vm2844_vm12 = vcmask 1042432   ;;  %vm2846_vm13 = vcmask 11264  }
  0x26   :  { %4192 = vst [vmem:[#allocation38_spill] sm:$0xff] %v3709_v15  ;;  %4193 = vst [vmem:[#allocation39_spill] sm:$0xff] %v3711_v22  ;;  %v3717_v16 = vld [vmem:[#allocation4 + $0x10] sm:$0xff] }
  0x27   :  { %4194 = vst [vmem:[#allocation40_spill] sm:$0xff] %v3713_v18  ;;  %4195 = vst [vmem:[#allocation41_spill] sm:$0xff] %v3717_v16 }
  0x92   :  { %v52_v9 = vpop.permute.xlu0 %51 }
  0x93   :  { %2982 = vmatmul.mubr.msk.f32.vlgmr.msra.gmra.mxu0 %vm53_vm4, %v52_v9 }
  0x94   :  { %2992 = vmatprep.mubr.msk.f32.mxu0 %vm3308_vm0, %v4076_v0  ;;  %2985 = vmatpush3.msra.mxu0 %v188_v10 }
  0x95   :  { %2986 = vmatprep.subr.mxu0 %v4076_v0 }
  0x96   :  { %2987 = vmatpush3.msra.mxu0 %v187_v11 }
  0x97   :  { %2988 = vmatprep.subr.mxu0 %v4076_v0 }
  0x98   :  { %2989 = vmatpush3.msra.mxu0 %v186_v12 }
  0x99   :  { %2990 = vmatprep.subr.mxu0 %v4076_v0 }
  0x9a   :  { %2991 = vmatpush3.msra.mxu0 %v185_v13  ;;  %v436_v13 = vld [vmem:[#allocation2 + $0x68] sm:$0xff] }
  0x9b   :  { %2995 = vmatprep.subr.mxu0 %v4076_v0 }
  0x9c   :  { %v154_v20 = vpop.permute.xlu1 %153 }
  0x9d   :  { %v160_v31 = vmul.f32 %v159_v24, %v154_v20 }
  0x9f   :  { %v143_v21 = vpop.permute.xlu0 %142 }
  0xa0   :  { %v149_v25 = vmul.f32 %v148_v19, %v143_v21  ;;  %v165_v29 = vpop.permute.xlu1 %164  ;;  %v603_v19 = vld [vmem:[#allocation2 + $0x70] sm:$0xff] }
  0xa1   :  { %v171_v34 = vmul.f32 %v170_v28, %v165_v29  ;;  %v2869_v28 = vld [vmem:[#allocation2 + $0x80] ss:$0 sm:$0xff] }
 0x153   :  { %v126_v26 = vpop.f32.mrf.mxu0 }
 0x154   :  { %v127_v27 = vadd.f32 %v2854_v23, %v126_v26 }
 0x155   :  { %v2983_v30 = vpop.f32.mrf.mxu0 }
 0x156   :  { %v150_v32 = vadd.f32 %v149_v25, %v127_v27 }
 0x158   :  { %v161_v33 = vadd.f32 %v160_v31, %v150_v32 }
 0x15a   :  { %v172_v36 = vadd.f32 %v171_v34, %v161_v33 }
 0x15c   :  { %v176_v39 = vrot.slane %v172_v36, 7 }
 0x15e   :  { %v182_v40 = vsel %vm181_vm5, %v173_v37, %v176_v39  ;;  %v787_v39 = vld [vmem:[#allocation2 + $0xb0] sm:$0xff] }
 0x15f   :  { %v3379_v41 = vsel %vm183_vm6, %v182_v40, %v179_v38  ;;  %v786_v40 = vld [vmem:[#allocation2 + $0xa8] sm:$0xff] }
 0x160   :  { %2993 = vmatmul.mubr.msk.f32.vlgmr.msra.gmra.mxu0 %vm194_vm7, %v3379_v41 }
 0x161   :  { %2997 = vmatprep.mubr.msk.f32.mxu0 %vm3308_vm0, %v4076_v0 }
 0x220   :  { %v264_v43 = vpop.f32.mrf.mxu0 }
 0x221   :  { %v265_v44 = vadd.f32 %v2859_v42, %v264_v43  ;;  %v785_v42 = vld [vmem:[#allocation2 + $0xa0] sm:$0xff] }
 0x222   :  { %v2994_v45 = vpop.f32.mrf.mxu0 }
 0x223   :  { %439 = vrot.lane.b32.xlu0 %v265_v44, %s3311_s27  ;;  %269 = vrot.lane.b32.xlu1 %v265_v44, %s3312_s28 }
 0x227   :  { %437 = vrot.lane.b32.xlu1 %v265_v44, %s3313_s29 }
 0x295   :  { %v440_v46 = vpop.permute.xlu0 %439  ;;  %v270_v47 = vpop.permute.xlu1 %269 }
 0x296   :  { %2996 = vmatpush3.xpose.msk.msra.mxu0 %vm271_vm8, %v270_v47  ;;  %3006 = vmatpush3.xpose.msk.msra.mxu1 %vm271_vm8, %v440_v46  ;;  %v2870_v47 = vld [vmem:[#allocation2 + $0x88] ss:$0 sm:$0xff] }
 0x297   :  { %3000 = vmatprep.subr.mxu0 %v4076_v0  ;;  %3015 = vmatprep.subr.mxu1 %v4076_v0 }
 0x299   :  { %2998 = vmatmul.mubr.msk.f32.vlgmr.msra.gmra.mxu0 %vm271_vm8, %v265_v44  ;;  %v438_v48 = vpop.permute.xlu1 %437 }
 0x29a   :  { %3008 = vmatmul.mubr.msk.f32.vlgmr.msra.gmra.mxu1 %vm271_vm8, %v438_v48  ;;  %3002 = vmatprep.mubr.msk.f32.mxu0 %vm3308_vm0, %v4076_v0 }
 0x29b   :  { %3019 = vmatprep.mubr.msk.f32.mxu1 %vm3308_vm0, %v4076_v0  ;;  %3016 = vmatpush3.msra.mxu1 %v604_v17 }
 0x29c   :  { %3017 = vmatprep.subr.mxu1 %v4076_v0 }
 0x29d   :  { %3018 = vmatpush3.msra.mxu1 %v603_v19 }
 0x29e   :  { %3059 = vmatprep.subr.mxu1 %v4076_v0 }
 0x359   :  { %v342_v49 = vpop.f32.mrf.mxu0 }
 0x35a   :  { %v346_v50 = vmul.f32 0.25, %v342_v49  ;;  %v511_v51 = vpop.f32.mrf.mxu1  ;;  %v2871_v49 = vld [vmem:[#allocation2 + $0x90] ss:$0 sm:$0xff] }
 0x35b   :  { %v515_v52 = vmul.f32 0.25, %v511_v51  ;;  %v2999_v53 = vpop.f32.mrf.mxu0 }
 0x35c   :  { %v3009_v54 = vpop.f32.mrf.mxu1  ;;  %v348_v55 = vsel %vm347_vm9, %v346_v50, -inf  ;;  %v881_v53 = vld [vmem:[#allocation2 + $0xf0] sm:$0xff] }
 0x35d   :  { %349 = vmax.xlane.f32.xlu0 %v348_v55  ;;  %v516_v56 = vsel %vm347_vm9, %v515_v52, -inf  ;;  %v880_v54 = vld [vmem:[#allocation2 + $0xe8] sm:$0xff]  ;;  %v879_v55 = vld [vmem:[#allocation2 + $0xe0] sm:$0xff] }
 0x35e   :  { %517 = vmax.xlane.f32.xlu1 %v516_v56  ;;  %v878_v56 = vld [vmem:[#allocation2 + $0xd8] sm:$0xff] }
 0x36f   :  { %359 = vrot.lane.b32.xlu1 %v265_v44, %s3314_s30 }
 0x3e6   :  { %v350_v57 = vpop.xlane.xlu0 %349 }
 0x3e7   :  { %v351_v58 = vsub.f32 %v346_v50, %v350_v57  ;;  %v518_v59 = vpop.xlane.xlu1 %517  ;;  %v877_v57 = vld [vmem:[#allocation2 + $0xd0] sm:$0xff] }
 0x3e8   :  { %v519_v60 = vsub.f32 %v515_v52, %v518_v59  ;;  %v882_v52 = vld [vmem:[#allocation2 + $0xf8] sm:$0xff]  ;;  %v875_v59 = vld [vmem:[#allocation2 + $0xc0] sm:$0xff] }
 0x3e9   :  { %v352_v61 = vmul.f32 1.442695, %v351_v58  ;;  %v876_v58 = vld [vmem:[#allocation2 + $0xc8] sm:$0xff] }
 0x3ea   :  { %v520_v62 = vmul.f32 1.442695, %v519_v60  ;;  %v2872_v60 = vld [vmem:[#allocation2 + $0xb8] ss:$0 sm:$0xff] }
 0x3eb   :  { %3173 = vpow2.f32 %v352_v61  ;;  %v360_v63 = vpop.permute.xlu1 %359 }
 0x3ec   :  { %3001 = vmatpush3.msra.mxu0 %v360_v63  ;;  %3175 = vpow2.f32 %v520_v62 }
 0x3ed   :  { %3010 = vmatprep.subr.mxu0 %v4076_v0 }
 0x3f8   :  { %v3174_v2 = vpop.eup %3173 }
 0x3f9   :  { %v354_v3 = vsel %vm347_vm9, %v3174_v2, 0.0  ;;  %v3176_v4 = vpop.eup %3175 }
 0x3fa   :  { %355 = vadd.xlane.f32.xlu0 %v354_v3  ;;  %v522_v5 = vsel %vm347_vm9, %v3176_v4, 0.0 }
 0x3fe   :  { %523 = vadd.xlane.f32.xlu0 %v522_v5 }
 0x414   :  { %527 = vrot.lane.b32.xlu0 %v265_v44, %s3315_s4 }
 0x483   :  { %v356_v6 = vpop.xlane.xlu0 %355 }
 0x484   :  { %3177 = vrcp.f32 %v356_v6 }
 0x487   :  { %v524_v7 = vpop.xlane.xlu0 %523 }
 0x488   :  { %3179 = vrcp.f32 %v524_v7 }
 0x48b   :  { %v528_v10 = vpop.permute.xlu0 %527 }
 0x491   :  { %v3178_v8 = vpop.eup %3177 }
 0x492   :  { %v358_v9 = vmul.f32 %v3178_v8, %v3174_v2 }
 0x494   :  { %3003 = vmatmul.mubr.msk.f32.vlgmr.msra.gmra.mxu0 %vm347_vm9, %v358_v9 }
 0x495   :  { %v3180_v11 = vpop.eup %3179  ;;  %3011 = vmatpush3.msra.mxu0 %v528_v10  ;;  %3012 = vmatprep.mubr.msk.f32.mxu0 %vm3308_vm0, %v4076_v0 }
 0x496   :  { %v526_v12 = vmul.f32 %v3180_v11, %v3176_v4  ;;  %3022 = vmatprep.subr.mxu0 %v4076_v0  ;;  %v2874_v11 = vld [vmem:[#allocation2 + $0x100] ss:$0 sm:$0xff] }
 0x498   :  { %3013 = vmatmul.mubr.msk.f32.vlgmr.msra.gmra.mxu0 %vm347_vm9, %v526_v12 }
 0x499   :  { %3023 = vmatpush3.msra.mxu0 %v436_v13  ;;  %3026 = vmatprep.mubr.msk.f32.mxu0 %vm3308_vm0, %v4076_v0 }
 0x49a   :  { %3024 = vmatprep.subr.mxu0 %v4076_v0 }
 0x49b   :  { %3025 = vmatpush3.msra.mxu0 %v435_v14 }
 0x49c   :  { %3029 = vmatprep.subr.mxu0 %v4076_v0 }
 0x554   :  { %v431_v20 = vpop.f32.mrf.mxu0 }
 0x555   :  { %3027 = vmatmul.mubr.msk.f32.vlgmr.msra.gmra.mxu0 %vm271_vm8, %v431_v20 }
 0x556   :  { %v3004_v21 = vpop.f32.mrf.mxu0  ;;  %3037 = vmatprep.mubr.msk.f32.mxu0 %vm3308_vm0, %v4076_v0  ;;  %3030 = vmatpush3.msra.mxu0 %v787_v39  ;;  %v2878_v39 = vld [vmem:[#allocation2 + $0x138] ss:$0 sm:$0xff] }
 0x557   :  { %3031 = vmatprep.subr.mxu0 %v4076_v0 }
 0x558   :  { %v599_v23 = vpop.f32.mrf.mxu0  ;;  %3032 = vmatpush3.msra.mxu0 %v786_v40 }
 0x559   :  { %3020 = vmatmul.mubr.msk.f32.vlgmr.msra.gmra.mxu1 %vm271_vm8, %v599_v23  ;;  %3033 = vmatprep.subr.mxu0 %v4076_v0 }
 0x55a   :  { %v3014_v24 = vpop.f32.mrf.mxu0  ;;  %3067 = vmatprep.mubr.msk.f32.mxu1 %vm3308_vm0, %v4076_v0  ;;  %3034 = vmatpush3.msra.mxu0 %v785_v42 }
 0x55b   :  { %3035 = vmatprep.subr.mxu0 %v4076_v0 }
 0x615   :  { %v747_v25 = vpop.f32.mrf.mxu0 }
 0x617   :  { %v3028_v26 = vpop.f32.mrf.mxu0 }
 0x618   :  { %v991_v26 = vld [vmem:[#allocation2 + $0x130] sm:$0xff] }
 0x619   :  { %v674_v27 = vpop.f32.mrf.mxu1  ;;  %3060 = vmatpush3.msra.mxu1 %v991_v26 }
 0x61a   :  { %v748_v29 = vadd.f32 %v747_v25, %v674_v27  ;;  %v990_v27 = vld [vmem:[#allocation2 + $0x128] sm:$0xff]  ;;  %3061 = vmatprep.subr.mxu1 %v4076_v0 }
 0x61b   :  { %v3021_v30 = vpop.f32.mrf.mxu1  ;;  %3062 = vmatpush3.msra.mxu1 %v990_v27 }
 0x61c   :  { %v756_v31 = vadd.f32 %v2869_v28, %v748_v29  ;;  %v989_v28 = vld [vmem:[#allocation2 + $0x120] sm:$0xff]  ;;  %3063 = vmatprep.subr.mxu1 %v4076_v0  ;;  %v988_v29 = vld [vmem:[#allocation2 + $0x118] sm:$0xff] }
 0x61d   :  { %3064 = vmatpush3.msra.mxu1 %v989_v28 }
 0x61e   :  { %v757_v32 = vadd.f32 %v756_v31, %v3379_v41  ;;  %v784_v41 = vld [vmem:[#allocation2 + $0x98] sm:$0xff]  ;;  %3065 = vmatprep.subr.mxu1 %v4076_v0 }
 0x61f   :  { %3036 = vmatpush3.msra.mxu0 %v784_v41  ;;  %3066 = vmatpush3.msra.mxu1 %v988_v29 }
 0x620   :  { %v760_v33 = vsel %vm194_vm7, %v757_v32, 0.0  ;;  %3040 = vmatprep.subr.mxu0 %v4076_v0  ;;  %3070 = vmatprep.subr.mxu1 %v4076_v0 }
 0x621   :  { %761 = vadd.xlane.f32.xlu1 %v760_v33 }
 0x6aa   :  { %v762_v34 = vpop.xlane.xlu1 %761 }
 0x6ab   :  { %v764_v35 = vmul.f32 0.03125, %v762_v34  ;;  %v2876_v34 = vld [vmem:[#allocation2 + $0x108] ss:$0 sm:$0xff] }
 0x6ad   :  { %v765_v36 = vsub.f32 %v757_v32, %v764_v35 }
 0x6af   :  { %v766_v37 = vmul.f32 %v765_v36, %v765_v36 }
 0x6b1   :  { %v767_v38 = vsel %vm194_vm7, %v766_v37, 0.0 }
 0x6b2   :  { %768 = vadd.xlane.f32.xlu0 %v767_v38 }
 0x73b   :  { %v769_v43 = vpop.xlane.xlu0 %768 }
 0x73c   :  { %v770_v44 = vmul.f32 0.03125, %v769_v43 }
 0x73e   :  { %v771_v45 = vadd.f32 1e-05, %v770_v44 }
 0x740   :  { %3181 = vrsqrt.f32 %v771_v45 }
 0x74d   :  { %v3182_v46 = vpop.eup %3181 }
 0x74e   :  { %v773_v48 = vmul.f32 %v3182_v46, %v765_v36  ;;  %v2877_v36 = vld [vmem:[#allocation2 + $0x110] ss:$0 sm:$0xff] }
 0x750   :  { %v778_v50 = vmul.f32 %v2870_v47, %v773_v48 }
 0x752   :  { %v783_v51 = vadd.f32 %v2871_v49, %v778_v50 }
 0x754   :  { %3038 = vmatmul.mubr.msk.f32.vlgmr.msra.gmra.mxu0 %vm194_vm7, %v783_v51 }
 0x755   :  { %3056 = vmatprep.mubr.msk.f32.mxu0 %vm3308_vm0, %v4076_v0  ;;  %3041 = vmatpush3.msra.mxu0 %v882_v52 }
 0x756   :  { %3042 = vmatprep.subr.mxu0 %v4076_v0 }
 0x757   :  { %3043 = vmatpush3.msra.mxu0 %v881_v53 }
 0x758   :  { %3044 = vmatprep.subr.mxu0 %v4076_v0 }
 0x759   :  { %3045 = vmatpush3.msra.mxu0 %v880_v54 }
 0x75a   :  { %3046 = vmatprep.subr.mxu0 %v4076_v0 }
 0x75b   :  { %3047 = vmatpush3.msra.mxu0 %v879_v55 }
 0x75c   :  { %3048 = vmatprep.subr.mxu0 %v4076_v0 }
 0x75d   :  { %3049 = vmatpush3.msra.mxu0 %v878_v56 }
 0x75e   :  { %3050 = vmatprep.subr.mxu0 %v4076_v0 }
 0x75f   :  { %3051 = vmatpush3.msra.mxu0 %v877_v57 }
 0x760   :  { %3052 = vmatprep.subr.mxu0 %v4076_v0 }
 0x761   :  { %3053 = vmatpush3.msra.mxu0 %v876_v58 }
 0x762   :  { %3054 = vmatprep.subr.mxu0 %v4076_v0 }
 0x763   :  { %3055 = vmatpush3.msra.mxu0 %v875_v59 }
 0x764   :  { %3075 = vmatprep.subr.mxu0 %v4076_v0 }
 0x814   :  { %v862_v61 = vpop.f32.mrf.mxu0 }
 0x815   :  { %v863_v62 = vadd.f32 %v2872_v60, %v862_v61 }
 0x816   :  { %v3039_v63 = vpop.f32.mrf.mxu0 }
 0x817   :  { %v866_v2 = vmul.f32 %v863_v62, %v863_v62 }
 0x819   :  { %v867_v3 = vmul.f32 %v866_v2, %v863_v62 }
 0x81b   :  { %v868_v4 = vmul.f32 0.044715, %v867_v3 }
 0x81d   :  { %v869_v5 = vadd.f32 %v868_v4, %v863_v62 }
 0x81f   :  { %v870_v6 = vmul.f32 0.7978846, %v869_v5 }
 0x821   :  { %3183 = vtanh.f32 %v870_v6 }
 0x82e   :  { %v3184_v7 = vpop.eup %3183 }
 0x82f   :  { %v872_v8 = vadd.f32 1.0, %v3184_v7 }
 0x831   :  { %v873_v9 = vmul.f32 0.5, %v872_v8 }
 0x833   :  { %v874_v10 = vmul.f32 %v873_v9, %v863_v62 }
 0x835   :  { %3057 = vmatmul.mubr.msk.f32.vlgmr.msra.gmra.mxu0 %vm888_vm10, %v874_v10  ;;  %v1236_v10 = vld [vmem:[#allocation2 + $0x148] sm:$0xff] }
 0x836   :  { %3077 = vmatprep.mubr.msk.f32.mxu0 %vm3308_vm0, %v4076_v0 }
 0x8f5   :  { %v958_v12 = vpop.f32.mrf.mxu0 }
 0x8f6   :  { %v959_v13 = vadd.f32 %v2874_v11, %v958_v12  ;;  %v1235_v11 = vld [vmem:[#allocation2 + $0x140] sm:$0xff]  ;;  %v1404_v12 = vld [vmem:[#allocation2 + $0x158] sm:$0xff] }
 0x8f7   :  { %v3058_v14 = vpop.f32.mrf.mxu0 }
 0x8f8   :  { %v962_v17 = vadd.f32 %v959_v13, %v783_v51  ;;  %v1403_v13 = vld [vmem:[#allocation2 + $0x150] sm:$0xff] }
 0x8fa   :  { %v965_v19 = vsel %vm194_vm7, %v962_v17, 0.0 }
 0x8fb   :  { %966 = vadd.xlane.f32.xlu1 %v965_v19 }
 0x984   :  { %v967_v20 = vpop.xlane.xlu1 %966 }
 0x985   :  { %v968_v21 = vmul.f32 0.03125, %v967_v20 }
 0x987   :  { %v969_v23 = vsub.f32 %v962_v17, %v968_v21 }
 0x989   :  { %v970_v24 = vmul.f32 %v969_v23, %v969_v23 }
 0x98b   :  { %v971_v25 = vsel %vm194_vm7, %v970_v24, 0.0 }
 0x98c   :  { %972 = vadd.xlane.f32.xlu0 %v971_v25  ;;  %v2888_v25 = vld [vmem:[#allocation2 + $0x160] ss:$0 sm:$0xff] }
 0xa15   :  { %v973_v30 = vpop.xlane.xlu0 %972 }
 0xa16   :  { %v974_v31 = vmul.f32 0.03125, %v973_v30 }
 0xa18   :  { %v975_v32 = vadd.f32 1e-05, %v974_v31 }
 0xa1a   :  { %3185 = vrsqrt.f32 %v975_v32 }
 0xa27   :  { %v3186_v33 = vpop.eup %3185 }
 0xa28   :  { %v977_v35 = vmul.f32 %v3186_v33, %v969_v23 }
 0xa2a   :  { %v982_v37 = vmul.f32 %v2876_v34, %v977_v35 }
 0xa2c   :  { %v3449_v38 = vadd.f32 %v2877_v36, %v982_v37  ;;  %v1586_v36 = vld [vmem:[#allocation2 + $0x190] sm:$0xff]  ;;  %v1585_v37 = vld [vmem:[#allocation2 + $0x188] sm:$0xff] }
 0xa2e   :  { %3068 = vmatmul.mubr.msk.f32.vlgmr.msra.gmra.mxu1 %vm194_vm7, %v3449_v38 }
 0xa2f   :  { %3072 = vmatprep.mubr.msk.f32.mxu1 %vm3308_vm0, %v4076_v0 }
 0xaee   :  { %v1066_v40 = vpop.f32.mrf.mxu1 }
 0xaef   :  { %v1067_v42 = vadd.f32 %v2878_v39, %v1066_v40  ;;  %v1584_v39 = vld [vmem:[#allocation2 + $0x180] sm:$0xff] }
 0xaf0   :  { %v3069_v41 = vpop.f32.mrf.mxu1 }
 0xaf1   :  { %1239 = vrot.lane.b32.xlu0 %v1067_v42, %s3311_s27  ;;  %1071 = vrot.lane.b32.xlu1 %v1067_v42, %s3312_s28 }
 0xaf5   :  { %1237 = vrot.lane.b32.xlu1 %v1067_v42, %s3313_s29 }
 0xb63   :  { %v1072_v43 = vpop.permute.xlu1 %1071  ;;  %v1240_v44 = vpop.permute.xlu0 %1239 }
 0xb64   :  { %3071 = vmatpush3.xpose.msk.msra.mxu1 %vm271_vm8, %v1072_v43 }
 0xb65   :  { %3080 = vmatprep.subr.mxu1 %v4076_v0 }
 0xb67   :  { %3073 = vmatmul.mubr.msk.f32.vlgmr.msra.gmra.mxu1 %vm271_vm8, %v1067_v42  ;;  %v1238_v45 = vpop.permute.xlu1 %1237 }
 0xb68   :  { %3081 = vmatpush3.xpose.msk.msra.mxu1 %vm271_vm8, %v1240_v44  ;;  %3082 = vmatprep.mubr.msk.f32.mxu1 %vm3308_vm0, %v4076_v0  ;;  %v2889_v44 = vld [vmem:[#allocation2 + $0x168] ss:$0 sm:$0xff] }
 0xb69   :  { %3090 = vmatprep.subr.mxu1 %v4076_v0 }
 0xb6b   :  { %3083 = vmatmul.mubr.msk.f32.vlgmr.msra.gmra.mxu1 %vm271_vm8, %v1238_v45 }
 0xb6c   :  { %3094 = vmatprep.mubr.msk.f32.mxu1 %vm3308_vm0, %v4076_v0  ;;  %3091 = vmatpush3.msra.mxu1 %v1404_v12 }
 0xb6d   :  { %3092 = vmatprep.subr.mxu1 %v4076_v0 }
 0xb6e   :  { %3093 = vmatpush3.msra.mxu1 %v1403_v13 }
 0xb6f   :  { %3104 = vmatprep.subr.mxu1 %v4076_v0 }
 0xc27   :  { %v1143_v46 = vpop.f32.mrf.mxu1 }
 0xc28   :  { %v1147_v47 = vmul.f32 0.25, %v1143_v46  ;;  %v2890_v46 = vld [vmem:[#allocation2 + $0x170] ss:$0 sm:$0xff] }
 0xc29   :  { %v3074_v48 = vpop.f32.mrf.mxu1 }
 0xc2a   :  { %v1148_v49 = vsel %vm347_vm9, %v1147_v47, -inf }
 0xc2b   :  { %1149 = vmax.xlane.f32.xlu1 %v1148_v49  ;;  %v1311_v50 = vpop.f32.mrf.mxu1  ;;  %v1681_v49 = vld [vmem:[#allocation2 + $0x1d8] sm:$0xff] }
 0xc2c   :  { %v1315_v51 = vmul.f32 0.25, %v1311_v50  ;;  %v1680_v50 = vld [vmem:[#allocation2 + $0x1d0] sm:$0xff] }
 0xc2d   :  { %v3084_v52 = vpop.f32.mrf.mxu1 }
 0xc2e   :  { %v1316_v53 = vsel %vm347_vm9, %v1315_v51, -inf  ;;  %v1678_v52 = vld [vmem:[#allocation2 + $0x1c0] sm:$0xff] }
 0xc2f   :  { %1317 = vmax.xlane.f32.xlu0 %v1316_v53  ;;  %v1677_v53 = vld [vmem:[#allocation2 + $0x1b8] sm:$0xff] }
 0xcb4   :  { %v1150_v54 = vpop.xlane.xlu1 %1149 }
 0xcb5   :  { %v1151_v55 = vsub.f32 %v1147_v47, %v1150_v54  ;;  %v1676_v54 = vld [vmem:[#allocation2 + $0x1b0] sm:$0xff] }
 0xcb7   :  { %v1152_v56 = vmul.f32 1.442695, %v1151_v55  ;;  %v1675_v55 = vld [vmem:[#allocation2 + $0x1a8] sm:$0xff] }
 0xcb8   :  { %v1318_v57 = vpop.xlane.xlu0 %1317 }
 0xcb9   :  { %3187 = vpow2.f32 %v1152_v56  ;;  %v1319_v58 = vsub.f32 %v1315_v51, %v1318_v57  ;;  %v1679_v51 = vld [vmem:[#allocation2 + $0x1c8] sm:$0xff]  ;;  %v1674_v56 = vld [vmem:[#allocation2 + $0x1a0] sm:$0xff]  ;;  %v2891_v57 = vld [vmem:[#allocation2 + $0x198] ss:$0 sm:$0xff] }
 0xcbb   :  { %v1320_v59 = vmul.f32 1.442695, %v1319_v58 }
 0xcbd   :  { %3189 = vpow2.f32 %v1320_v59 }
 0xcc6   :  { %v3188_v60 = vpop.eup %3187 }
 0xcc7   :  { %v1154_v61 = vsel %vm347_vm9, %v3188_v60, 0.0 }
 0xcc8   :  { %1155 = vadd.xlane.f32.xlu0 %v1154_v61 }
 0xcca   :  { %v3190_v62 = vpop.eup %3189 }
 0xccb   :  { %v1322_v63 = vsel %vm347_vm9, %v3190_v62, 0.0 }
 0xccc   :  { %1323 = vadd.xlane.f32.xlu1 %v1322_v63 }
 0xcdd   :  { %1327 = vrot.lane.b32.xlu1 %v1067_v42, %s3315_s4 }
 0xcde   :  { %1159 = vrot.lane.b32.xlu0 %v1067_v42, %s3314_s30 }
 0xd51   :  { %v1156_v2 = vpop.xlane.xlu0 %1155 }
 0xd52   :  { %3191 = vrcp.f32 %v1156_v2 }
 0xd55   :  { %v1324_v3 = vpop.xlane.xlu1 %1323  ;;  %v1160_v4 = vpop.permute.xlu0 %1159 }
 0xd56   :  { %3193 = vrcp.f32 %v1324_v3  ;;  %3076 = vmatpush3.msra.mxu0 %v1160_v4 }
 0xd57   :  { %3085 = vmatprep.subr.mxu0 %v4076_v0 }
 0xd59   :  { %v1328_v7 = vpop.permute.xlu1 %1327 }
 0xd5f   :  { %v3192_v5 = vpop.eup %3191 }
 0xd60   :  { %v1158_v6 = vmul.f32 %v3192_v5, %v3188_v60 }
 0xd62   :  { %3078 = vmatmul.mubr.msk.f32.vlgmr.msra.gmra.mxu0 %vm347_vm9, %v1158_v6 }
 0xd63   :  { %v3194_v8 = vpop.eup %3193  ;;  %3086 = vmatpush3.msra.mxu0 %v1328_v7  ;;  %3087 = vmatprep.mubr.msk.f32.mxu0 %vm3308_vm0, %v4076_v0 }
 0xd64   :  { %v1326_v9 = vmul.f32 %v3194_v8, %v3190_v62  ;;  %3097 = vmatprep.subr.mxu0 %v4076_v0  ;;  %v2893_v8 = vld [vmem:[#allocation2 + $0x1e0] ss:$0 sm:$0xff] }
 0xd66   :  { %3088 = vmatmul.mubr.msk.f32.vlgmr.msra.gmra.mxu0 %vm347_vm9, %v1326_v9 }
 0xd67   :  { %3098 = vmatpush3.msra.mxu0 %v1236_v10  ;;  %3101 = vmatprep.mubr.msk.f32.mxu0 %vm3308_vm0, %v4076_v0 }
 0xd68   :  { %3099 = vmatprep.subr.mxu0 %v4076_v0 }
 0xd69   :  { %3100 = vmatpush3.msra.mxu0 %v1235_v11 }
 0xd6a   :  { %3115 = vmatprep.subr.mxu0 %v4076_v0 }
 0xe22   :  { %v1231_v14 = vpop.f32.mrf.mxu0 }
 0xe23   :  { %3102 = vmatmul.mubr.msk.f32.vlgmr.msra.gmra.mxu0 %vm271_vm8, %v1231_v14 }
 0xe24   :  { %v3079_v17 = vpop.f32.mrf.mxu0  ;;  %3131 = vmatprep.mubr.msk.f32.mxu0 %vm3308_vm0, %v4076_v0  ;;  %3116 = vmatpush3.msra.mxu0 %v1681_v49  ;;  %v3582_v49 = vld [vmem:[#allocation4 + $0xd8] sm:$0xff] }
 0xe25   :  { %3117 = vmatprep.subr.mxu0 %v4076_v0  ;;  %4168 = vst [vmem:[#allocation14_spill] sm:$0xff] %v3582_v49 }
 0xe26   :  { %v1399_v19 = vpop.f32.mrf.mxu0  ;;  %3118 = vmatpush3.msra.mxu0 %v1680_v50  ;;  %v3585_v50 = vld [vmem:[#allocation4 + $0xd0] sm:$0xff] }
 0xe27   :  { %3095 = vmatmul.mubr.msk.f32.vlgmr.msra.gmra.mxu1 %vm271_vm8, %v1399_v19  ;;  %3119 = vmatprep.subr.mxu0 %v4076_v0  ;;  %4169 = vst [vmem:[#allocation15_spill] sm:$0xff] %v3585_v50 }
 0xe28   :  { %v3089_v20 = vpop.f32.mrf.mxu0  ;;  %3112 = vmatprep.mubr.msk.f32.mxu1 %vm3308_vm0, %v4076_v0  ;;  %3105 = vmatpush3.msra.mxu1 %v1586_v36  ;;  %v3542_v36 = vld [vmem:[#allocation4 + $0x1b0] sm:$0xff] }
 0xe29   :  { %3106 = vmatprep.subr.mxu1 %v4076_v0  ;;  %3120 = vmatpush3.msra.mxu0 %v1679_v51  ;;  %v3588_v51 = vld [vmem:[#allocation4 + $0xb8] sm:$0xff] }
 0xe2a   :  { %3107 = vmatpush3.msra.mxu1 %v1585_v37  ;;  %3121 = vmatprep.subr.mxu0 %v4076_v0  ;;  %v3545_v37 = vld [vmem:[#allocation4 + $0x198] sm:$0xff]  ;;  %4170 = vst [vmem:[#allocation16_spill] sm:$0xff] %v3588_v51 }
 0xe2b   :  { %3108 = vmatprep.subr.mxu1 %v4076_v0  ;;  %3122 = vmatpush3.msra.mxu0 %v1678_v52  ;;  %v3591_v52 = vld [vmem:[#allocation4 + $0xb0] sm:$0xff] }
 0xe2c   :  { %3109 = vmatpush3.msra.mxu1 %v1584_v39  ;;  %3123 = vmatprep.subr.mxu0 %v4076_v0  ;;  %v3549_v39 = vld [vmem:[#allocation4 + $0x190] sm:$0xff]  ;;  %4171 = vst [vmem:[#allocation17_spill] sm:$0xff] %v3591_v52 }
 0xe2d   :  { %3110 = vmatprep.subr.mxu1 %v4076_v0  ;;  %3124 = vmatpush3.msra.mxu0 %v1677_v53  ;;  %v3594_v53 = vld [vmem:[#allocation4 + $0x98] sm:$0xff] }
 0xe2e   :  { %3125 = vmatprep.subr.mxu0 %v4076_v0  ;;  %4172 = vst [vmem:[#allocation18_spill] sm:$0xff] %v3594_v53 }
 0xe2f   :  { %3126 = vmatpush3.msra.mxu0 %v1676_v54  ;;  %v3597_v54 = vld [vmem:[#allocation4 + $0x90] sm:$0xff] }
 0xe30   :  { %3127 = vmatprep.subr.mxu0 %v4076_v0  ;;  %4173 = vst [vmem:[#allocation19_spill] sm:$0xff] %v3597_v54 }
 0xe31   :  { %3128 = vmatpush3.msra.mxu0 %v1675_v55  ;;  %v3600_v55 = vld [vmem:[#allocation4 + $0x78] sm:$0xff] }
 0xe32   :  { %3129 = vmatprep.subr.mxu0 %v4076_v0  ;;  %4174 = vst [vmem:[#allocation20_spill] sm:$0xff] %v3600_v55 }
 0xe33   :  { %3130 = vmatpush3.msra.mxu0 %v1674_v56  ;;  %v3603_v56 = vld [vmem:[#allocation4 + $0x70] sm:$0xff] }
 0xe34   :  { %4175 = vst [vmem:[#allocation21_spill] sm:$0xff] %v3603_v56 }
 0xee3   :  { %v1547_v21 = vpop.f32.mrf.mxu0 }
 0xee5   :  { %v3103_v23 = vpop.f32.mrf.mxu0 }
 0xee6   :  { %v43_v23 = vld [vmem:[%s4068_s0 + $0x6] sm:$0x1] }
 0xee7   :  { %v1474_v24 = vpop.f32.mrf.mxu1 }
 0xee8   :  { %v1548_v26 = vadd.f32 %v1547_v21, %v1474_v24  ;;  %v4074_v24 = vmov 1  }
 0xee9   :  { %v3096_v27 = vpop.f32.mrf.mxu1 }
 0xeea   :  { %v1556_v28 = vadd.f32 %v2888_v25, %v1548_v26  ;;  %v1789_v25 = vld [vmem:[#allocation2 + $0x210] sm:$0xff]  ;;  %v1788_v26 = vld [vmem:[#allocation2 + $0x208] sm:$0xff]  ;;  %v1787_v27 = vld [vmem:[#allocation2 + $0x200] sm:$0xff] }
 0xeec   :  { %v1557_v29 = vadd.f32 %v1556_v28, %v3449_v38  ;;  %v1583_v38 = vld [vmem:[#allocation2 + $0x178] sm:$0xff] }
 0xeed   :  { %3111 = vmatpush3.msra.mxu1 %v1583_v38  ;;  %v1786_v28 = vld [vmem:[#allocation2 + $0x1f8] sm:$0xff] }
 0xeee   :  { %v1560_v30 = vsel %vm194_vm7, %v1557_v29, 0.0  ;;  %3134 = vmatprep.subr.mxu1 %v4076_v0  ;;  %v3552_v38 = vld [vmem:[#allocation4 + $0x178] sm:$0xff] }
 0xeef   :  { %1561 = vadd.xlane.f32.xlu1 %v1560_v30  ;;  %v3527_v30 = vld [vmem:[#allocation4 + $0x1f8] sm:$0xff] }
 0xef0   :  { %4167 = vst [vmem:[#allocation13_spill] sm:$0xff] %v3527_v30  ;;  %2084 = vmatprep.subr.mxu0 %v3527_v30 }
 0xf78   :  { %v1562_v31 = vpop.xlane.xlu1 %1561 }
 0xf79   :  { %v1563_v32 = vmul.f32 0.03125, %v1562_v31  ;;  %v3317_v31 = vmov 2  }
 0xf7a   :  { %3164 = vset.pattern.permute.xlu0 %v3317_v31  ;;  %v3668_v31 = vld [vmem:[#allocation4 + $0xa8] sm:$0xff] }
 0xf7b   :  { %v1564_v33 = vsub.f32 %v1557_v29, %v1563_v32  ;;  %v3525_v29 = vld [vmem:[#allocation4 + $0x1e8] sm:$0xff]  ;;  %v3530_v32 = vld [vmem:[#allocation4 + $0x1f0] sm:$0xff]  ;;  %4179 = vst [vmem:[#allocation25_spill] sm:$0xff] %v3668_v31 }
 0xf7c   :  { %4166 = vst [vmem:[#allocation12_spill] sm:$0xff] %v3525_v29 }
 0xf7d   :  { %v1565_v34 = vmul.f32 %v1564_v33, %v1564_v33 }
 0xf7f   :  { %v1566_v35 = vsel %vm194_vm7, %v1565_v34, 0.0  ;;  %v3536_v34 = vld [vmem:[#allocation4 + $0x1d0] sm:$0xff] }
 0xf80   :  { %1567 = vadd.xlane.f32.xlu0 %v1566_v35  ;;  %v3539_v35 = vld [vmem:[#allocation4 + $0x1b8] sm:$0xff] }
0x1009   :  { %v1568_v40 = vpop.xlane.xlu0 %1567 }
0x100a   :  { %v1569_v42 = vmul.f32 0.03125, %v1568_v40  ;;  %v3555_v40 = vld [vmem:[#allocation4 + $0x170] sm:$0xff] }
0x100c   :  { %v1570_v41 = vadd.f32 1e-05, %v1569_v42  ;;  %v3558_v42 = vld [vmem:[#allocation4 + $0x158] sm:$0xff] }
0x100e   :  { %3195 = vrsqrt.f32 %v1570_v41  ;;  %v3561_v41 = vld [vmem:[#allocation4 + $0x150] sm:$0xff] }
0x101b   :  { %v3196_v43 = vpop.eup %3195 }
0x101c   :  { %v1572_v45 = vmul.f32 %v3196_v43, %v1564_v33  ;;  %v3533_v33 = vld [vmem:[#allocation4 + $0x1d8] sm:$0xff] }
0x101d   :  { %v3564_v43 = vld [vmem:[#allocation4 + $0x138] sm:$0xff] }
0x101e   :  { %v1577_v47 = vmul.f32 %v2889_v44, %v1572_v45  ;;  %v3567_v44 = vld [vmem:[#allocation4 + $0x130] sm:$0xff]  ;;  %v3570_v45 = vld [vmem:[#allocation4 + $0x118] sm:$0xff] }
0x1020   :  { %v1582_v48 = vadd.f32 %v2890_v46, %v1577_v47  ;;  %v3573_v46 = vld [vmem:[#allocation4 + $0x110] sm:$0xff]  ;;  %v3576_v47 = vld [vmem:[#allocation4 + $0xf8] sm:$0xff] }
0x1022   :  { %3113 = vmatmul.mubr.msk.f32.vlgmr.msra.gmra.mxu1 %vm194_vm7, %v1582_v48 }
0x1023   :  { %3142 = vmatprep.mubr.msk.f32.mxu1 %vm3308_vm0, %v4076_v0  ;;  %3135 = vmatpush3.msra.mxu1 %v1789_v25  ;;  %v3656_v25 = vld [vmem:[#allocation4 + $0xe8] sm:$0xff] }
0x1024   :  { %3136 = vmatprep.subr.mxu1 %v4076_v0 }
0x1025   :  { %3137 = vmatpush3.msra.mxu1 %v1788_v26  ;;  %v3659_v26 = vld [vmem:[#allocation4 + $0xe0] sm:$0xff] }
0x1026   :  { %3138 = vmatprep.subr.mxu1 %v4076_v0 }
0x1027   :  { %3139 = vmatpush3.msra.mxu1 %v1787_v27  ;;  %v3662_v27 = vld [vmem:[#allocation4 + $0xc8] sm:$0xff] }
0x1028   :  { %3140 = vmatprep.subr.mxu1 %v4076_v0  ;;  %4177 = vst [vmem:[#allocation23_spill] sm:$0xff] %v3662_v27 }
0x1029   :  { %3141 = vmatpush3.msra.mxu1 %v1786_v28  ;;  %v3665_v28 = vld [vmem:[#allocation4 + $0xc0] sm:$0xff] }
0x102a   :  { %2013 = vmatprep.subr.mxu1 %v3525_v29  ;;  %4178 = vst [vmem:[#allocation24_spill] sm:$0xff] %v3665_v28 }
0x10e2   :  { %v1661_v58 = vpop.f32.mrf.mxu1 }
0x10e3   :  { %v1662_v59 = vadd.f32 %v2891_v57, %v1661_v58  ;;  %v3606_v57 = vld [vmem:[#allocation4 + $0x58] sm:$0xff] }
0x10e4   :  { %v3114_v60 = vpop.f32.mrf.mxu1  ;;  %4176 = vst [vmem:[#allocation22_spill] sm:$0xff] %v3606_v57 }
0x10e5   :  { %v1665_v61 = vmul.f32 %v1662_v59, %v1662_v59 }
0x10e7   :  { %v1666_v62 = vmul.f32 %v1665_v61, %v1662_v59 }
0x10e9   :  { %v1667_v63 = vmul.f32 0.044715, %v1666_v62  ;;  %v2895_v62 = vld [vmem:[#allocation2 + $0x1e8] ss:$0 sm:$0xff] }
0x10eb   :  { %v1668_v2 = vadd.f32 %v1667_v63, %v1662_v59 }
0x10ed   :  { %v1669_v3 = vmul.f32 0.7978846, %v1668_v2  ;;  %v2896_v2 = vld [vmem:[#allocation2 + $0x1f0] ss:$0 sm:$0xff] }
0x10ef   :  { %3197 = vtanh.f32 %v1669_v3 }
0x10fc   :  { %v3198_v4 = vpop.eup %3197 }
0x10fd   :  { %v1671_v5 = vadd.f32 1.0, %v3198_v4 }
0x10ff   :  { %v1672_v6 = vmul.f32 0.5, %v1671_v5  ;;  %v3611_v5 = vld [vmem:[#allocation4 + $0x1e0] sm:$0xff] }
0x1101   :  { %v1673_v7 = vmul.f32 %v1672_v6, %v1662_v59  ;;  %v3613_v6 = vld [vmem:[#allocation4 + $0x1c8] sm:$0xff] }
0x1103   :  { %3132 = vmatmul.mubr.msk.f32.vlgmr.msra.gmra.mxu0 %vm888_vm10, %v1673_v7  ;;  %v3616_v7 = vld [vmem:[#allocation4 + $0x1c0] sm:$0xff] }
0x1104   :  { %2148 = vmatprep.mubr.f32.mxu0 %v4076_v0  ;;  %2085 = vmatpush1.msra.mxu0 %v3530_v32 }
0x1105   :  { %2086 = vmatprep.subr.mxu0 %v3533_v33 }
0x1106   :  { %2087 = vmatpush1.msra.mxu0 %v3536_v34 }
0x1107   :  { %2088 = vmatprep.subr.mxu0 %v3539_v35 }
0x1108   :  { %2089 = vmatpush1.msra.mxu0 %v3542_v36 }
0x1109   :  { %2090 = vmatprep.subr.mxu0 %v3545_v37 }
0x110a   :  { %2091 = vmatpush1.msra.mxu0 %v3549_v39 }
0x110b   :  { %2092 = vmatprep.subr.mxu0 %v3552_v38 }
0x110c   :  { %2093 = vmatpush1.msra.mxu0 %v3555_v40 }
0x110d   :  { %2094 = vmatprep.subr.mxu0 %v3558_v42 }
0x110e   :  { %2095 = vmatpush1.msra.mxu0 %v3561_v41 }
0x110f   :  { %2096 = vmatprep.subr.mxu0 %v3564_v43 }
0x1110   :  { %2097 = vmatpush1.msra.mxu0 %v3567_v44 }
0x1111   :  { %2098 = vmatprep.subr.mxu0 %v3570_v45 }
0x1112   :  { %2099 = vmatpush1.msra.mxu0 %v3573_v46 }
0x1113   :  { %2100 = vmatprep.subr.mxu0 %v3576_v47 }
0x11c3   :  { %v1756_v9 = vpop.f32.mrf.mxu0 }
0x11c4   :  { %v1757_v10 = vadd.f32 %v2893_v8, %v1756_v9  ;;  %v3619_v8 = vld [vmem:[#allocation4 + $0x1a8] sm:$0xff]  ;;  %v3623_v9 = vld [vmem:[#allocation4 + $0x1a0] sm:$0xff] }
0x11c5   :  { %v3133_v11 = vpop.f32.mrf.mxu0 }
0x11c6   :  { %v1760_v12 = vadd.f32 %v1757_v10, %v1582_v48  ;;  %v3579_v48 = vld [vmem:[#allocation4 + $0xf0] sm:$0xff]  ;;  %v3626_v10 = vld [vmem:[#allocation4 + $0x188] sm:$0xff]  ;;  %v3629_v11 = vld [vmem:[#allocation4 + $0x180] sm:$0xff] }
0x11c7   :  { %2101 = vmatpush1.msra.mxu0 %v3579_v48 }
0x11c8   :  { %v1763_v13 = vsel %vm194_vm7, %v1760_v12, 0.0  ;;  %2102 = vmatprep.subr.mxu0 %v3582_v49 }
0x11c9   :  { %1764 = vadd.xlane.f32.xlu0 %v1763_v13  ;;  %2103 = vmatpush1.msra.mxu0 %v3585_v50  ;;  %v3635_v13 = vld [vmem:[#allocation4 + $0x160] sm:$0xff] }
0x11ca   :  { %2104 = vmatprep.subr.mxu0 %v3588_v51 }
0x11cb   :  { %2105 = vmatpush1.msra.mxu0 %v3591_v52 }
0x11cc   :  { %2106 = vmatprep.subr.mxu0 %v3594_v53 }
0x11cd   :  { %2107 = vmatpush1.msra.mxu0 %v3597_v54 }
0x11ce   :  { %2108 = vmatprep.subr.mxu0 %v3600_v55 }
0x11cf   :  { %2109 = vmatpush1.msra.mxu0 %v3603_v56 }
0x11d0   :  { %2110 = vmatprep.subr.mxu0 %v3606_v57 }
0x11df   :  { %1867 = vperm.xlu0 %3164, %v43_v23  }
0x11e3   :  { %3172 = vset.pattern.permute.xlu0 %v4074_v24 }
0x1252   :  { %v1765_v14 = vpop.xlane.xlu0 %1764 }
0x1253   :  { %v1766_v17 = vmul.f32 0.03125, %v1765_v14  ;;  %v3638_v14 = vld [vmem:[#allocation4 + $0x148] sm:$0xff] }
0x1255   :  { %v3512_v19 = vsub.f32 %v1760_v12, %v1766_v17  ;;  %v3632_v12 = vld [vmem:[#allocation4 + $0x168] sm:$0xff]  ;;  %v3641_v17 = vld [vmem:[#allocation4 + $0x140] sm:$0xff] }
0x1257   :  { %v1768_v20 = vmul.f32 %v3512_v19, %v3512_v19 }
0x1259   :  { %v1769_v21 = vsel %vm194_vm7, %v1768_v20, 0.0  ;;  %v3647_v20 = vld [vmem:[#allocation4 + $0x120] sm:$0xff] }
0x125a   :  { %1770 = vadd.xlane.f32.xlu1 %v1769_v21  ;;  %v3650_v21 = vld [vmem:[#allocation4 + $0x108] sm:$0xff] }
0x126b   :  { %1879 = vperm.xlu1 %3163, %v43_v23  }
0x126f   :  { %3165 = vset.pattern.permute.xlu1 %v4074_v24  ;;  %v3703_v24 = vld [vmem:[#allocation4 + $0x20] sm:$0xff] }
0x1270   :  { %1886 = vperm.xlu1 %3165, %v43_v23   ;;  %v3653_v23 = vld [vmem:[#allocation4 + $0x100] sm:$0xff]  ;;  %4190 = vst [vmem:[#allocation36_spill] sm:$0xff] %v3703_v24 }
0x1274   :  { %3166 = vset.pattern.permute.xlu1 %v4072_v1  ;;  %v3699_v1 = vld [vmem:[#allocation4 + $0x38] sm:$0xff] }
0x1275   :  { %4189 = vst [vmem:[#allocation35_spill] sm:$0xff] %v3699_v1 }
0x12e3   :  { %v1771_v58 = vpop.xlane.xlu1 %1770 }
0x12e4   :  { %v1772_v59 = vmul.f32 0.03125, %v1771_v58  ;;  %v3671_v58 = vld [vmem:[#allocation4 + $0xa0] sm:$0xff] }
0x12e5   :  { %4180 = vst [vmem:[#allocation26_spill] sm:$0xff] %v3671_v58 }
0x12e6   :  { %v1773_v60 = vadd.f32 1e-05, %v1772_v59  ;;  %v3674_v59 = vld [vmem:[#allocation4 + $0x88] sm:$0xff] }
0x12e7   :  { %4181 = vst [vmem:[#allocation27_spill] sm:$0xff] %v3674_v59 }
0x12e8   :  { %3199 = vrsqrt.f32 %v1773_v60  ;;  %v3677_v60 = vld [vmem:[#allocation4 + $0x80] sm:$0xff] }
0x12e9   :  { %4182 = vst [vmem:[#allocation28_spill] sm:$0xff] %v3677_v60 }
0x12f5   :  { %v3200_v61 = vpop.eup %3199 }
0x12f6   :  { %v1775_v63 = vmul.f32 %v3200_v61, %v3512_v19  ;;  %v3644_v19 = vld [vmem:[#allocation4 + $0x128] sm:$0xff] }
0x12f7   :  { %v3680_v61 = vld [vmem:[#allocation4 + $0x68] sm:$0xff] }
0x12f8   :  { %v1780_v3 = vmul.f32 %v2895_v62, %v1775_v63  ;;  %4183 = vst [vmem:[#allocation29_spill] sm:$0xff] %v3680_v61  ;;  %v3683_v62 = vld [vmem:[#allocation4 + $0x60] sm:$0xff]  ;;  %v3686_v63 = vld [vmem:[#allocation4 + $0x48] sm:$0xff] }
0x12f9   :  { %4184 = vst [vmem:[#allocation30_spill] sm:$0xff] %v3683_v62  ;;  %4185 = vst [vmem:[#allocation31_spill] sm:$0xff] %v3686_v63 }
0x12fa   :  { %v1785_v4 = vadd.f32 %v2896_v2, %v1780_v3  ;;  %v3691_v2 = vld [vmem:[#allocation4 + $0x40] sm:$0xff]  ;;  %v3693_v3 = vld [vmem:[#allocation4 + $0x50] sm:$0xff] }
0x12fb   :  { %4186 = vst [vmem:[#allocation32_spill] sm:$0xff] %v3691_v2  ;;  %4187 = vst [vmem:[#allocation33_spill] sm:$0xff] %v3693_v3  ;;  %2111 = vmatpush1.msra.mxu0 %v3693_v3 }
0x12fc   :  { %3143 = vmatmul.mubr.msk.f32.vlgmr.msra.gmra.mxu1 %vm194_vm7, %v1785_v4  ;;  %v3697_v4 = vld [vmem:[#allocation4 + $0x28] sm:$0xff]  ;;  %2112 = vmatprep.subr.mxu0 %v3699_v1  ;;  %v1790_v1 = vld [vmem:[#allocation2 + $0x218] sm:$0x1] }
0x12fd   :  { %2014 = vmatpush1.msra.mxu1 %v3611_v5  ;;  %2077 = vmatprep.mubr.f32.mxu1 %v4076_v0  ;;  %4188 = vst [vmem:[#allocation34_spill] sm:$0xff] %v3697_v4  ;;  %v3705_v0 = vld [vmem:[#allocation4 + $0x30] sm:$0xff] }
0x12fe   :  { %2015 = vmatprep.subr.mxu1 %v3613_v6  ;;  %4191 = vst [vmem:[#allocation37_spill] sm:$0xff] %v3705_v0  ;;  %2113 = vmatpush1.msra.mxu0 %v3705_v0  ;;  %v1864_v0 = vld [vmem:[#allocation2 + $0x28] sm:$0x1] }
0x12ff   :  { %2016 = vmatpush1.msra.mxu1 %v3616_v7  ;;  %2114 = vmatprep.subr.mxu0 %v3711_v22 }
0x1300   :  { %2017 = vmatprep.subr.mxu1 %v3619_v8  ;;  %2115 = vmatpush1.msra.mxu0 %v3717_v16 }
0x1301   :  { %2018 = vmatpush1.msra.mxu1 %v3623_v9  ;;  %2264 = vmatprep.subr.mxu0 %v3527_v30 }
0x1302   :  { %2019 = vmatprep.subr.mxu1 %v3626_v10 }
0x1303   :  { %2020 = vmatpush1.msra.mxu1 %v3629_v11 }
0x1304   :  { %2021 = vmatprep.subr.mxu1 %v3632_v12 }
0x1305   :  { %2022 = vmatpush1.msra.mxu1 %v3635_v13 }
0x1306   :  { %2023 = vmatprep.subr.mxu1 %v3638_v14 }
0x1307   :  { %2024 = vmatpush1.msra.mxu1 %v3641_v17 }
0x1308   :  { %2025 = vmatprep.subr.mxu1 %v3644_v19 }
0x1309   :  { %2026 = vmatpush1.msra.mxu1 %v3647_v20 }
0x130a   :  { %2027 = vmatprep.subr.mxu1 %v3650_v21 }
0x130b   :  { %2028 = vmatpush1.msra.mxu1 %v3653_v23 }
0x130c   :  { %2029 = vmatprep.subr.mxu1 %v3656_v25 }
0x130d   :  { %2030 = vmatpush1.msra.mxu1 %v3659_v26 }
0x130e   :  { %2031 = vmatprep.subr.mxu1 %v3662_v27 }
0x130f   :  { %2032 = vmatpush1.msra.mxu1 %v3665_v28 }
0x1310   :  { %2033 = vmatprep.subr.mxu1 %v3668_v31 }
0x1311   :  { %2034 = vmatpush1.msra.mxu1 %v3671_v58 }
0x1312   :  { %2035 = vmatprep.subr.mxu1 %v3674_v59 }
0x1313   :  { %2036 = vmatpush1.msra.mxu1 %v3677_v60 }
0x1314   :  { %2037 = vmatprep.subr.mxu1 %v3680_v61 }
0x1315   :  { %2038 = vmatpush1.msra.mxu1 %v3683_v62 }
0x1316   :  { %2039 = vmatprep.subr.mxu1 %v3686_v63 }
0x1317   :  { %2040 = vmatpush1.msra.mxu1 %v3691_v2 }
0x1318   :  { %2041 = vmatprep.subr.mxu1 %v3697_v4 }
0x1319   :  { %2042 = vmatpush1.msra.mxu1 %v3703_v24  ;;  %v1868_v24 = vpop.permute.xlu0 %1867 }
0x131a   :  { %2043 = vmatprep.subr.mxu1 %v3709_v15  ;;  %v1870_v4 = vmul.f32 %v1868_v24, %v1864_v0  ;;  %v4196_v0 = vld [vmem:[#allocation22_spill] sm:$0xff]  ;;  %v4198_v24 = vld [vmem:[#allocation33_spill] sm:$0xff] }
0x131b   :  { %2044 = vmatpush1.msra.mxu1 %v3713_v18 }
0x131c   :  { %2193 = vmatprep.subr.mxu1 %v3525_v29 }
0x13bc   :  { %v1860_v3 = vpop.f32.mrf.mxu1 }
0x13bd   :  { %v1861_v2 = vadd.f32 %v1860_v3, %v1790_v1  ;;  %v4197_v1 = vld [vmem:[#allocation32_spill] sm:$0xff] }
0x13be   :  { %v3144_v57 = vpop.f32.mrf.mxu1  ;;  %v4201_v3 = vld [vmem:[#allocation36_spill] sm:$0xff] }
0x13bf   :  { %v3723_v15 = vadd.f32 %v1870_v4, %v1861_v2  ;;  %v4199_v57 = vld [vmem:[#allocation34_spill] sm:$0xff]  ;;  %v4200_v2 = vld [vmem:[#allocation35_spill] sm:$0xff]  ;;  %v4202_v4 = vld [vmem:[#allocation37_spill] sm:$0xff] }
0x13c1   :  { %2078 = vmatmul.mubr.f32.vlgmr.msra.gmra.mxu1 %v3723_v15  ;;  %2149 = vmatmul.mubr.f32.vlgmr.msra.gmra.mxu0 %v3723_v15 }
0x13c2   :  { %2194 = vmatpush1.msra.mxu1 %v3611_v5  ;;  %2265 = vmatpush1.msra.mxu0 %v3530_v32 }
0x13c3   :  { %2195 = vmatprep.subr.mxu1 %v3613_v6  ;;  %2266 = vmatprep.subr.mxu0 %v3533_v33 }
0x13c4   :  { %2196 = vmatpush1.msra.mxu1 %v3616_v7  ;;  %2267 = vmatpush1.msra.mxu0 %v3536_v34 }
0x13c5   :  { %2197 = vmatprep.subr.mxu1 %v3619_v8  ;;  %2268 = vmatprep.subr.mxu0 %v3539_v35 }
0x13c6   :  { %2198 = vmatpush1.msra.mxu1 %v3623_v9  ;;  %2269 = vmatpush1.msra.mxu0 %v3542_v36 }
0x13c7   :  { %2199 = vmatprep.subr.mxu1 %v3626_v10  ;;  %2270 = vmatprep.subr.mxu0 %v3545_v37 }
0x13c8   :  { %2200 = vmatpush1.msra.mxu1 %v3629_v11  ;;  %2271 = vmatpush1.msra.mxu0 %v3549_v39 }
0x13c9   :  { %2201 = vmatprep.subr.mxu1 %v3632_v12  ;;  %2272 = vmatprep.subr.mxu0 %v3552_v38 }
0x13ca   :  { %2202 = vmatpush1.msra.mxu1 %v3635_v13  ;;  %2273 = vmatpush1.msra.mxu0 %v3555_v40 }
0x13cb   :  { %2203 = vmatprep.subr.mxu1 %v3638_v14  ;;  %2274 = vmatprep.subr.mxu0 %v3558_v42 }
0x13cc   :  { %2204 = vmatpush1.msra.mxu1 %v3641_v17  ;;  %2275 = vmatpush1.msra.mxu0 %v3561_v41 }
0x13cd   :  { %2205 = vmatprep.subr.mxu1 %v3644_v19  ;;  %2276 = vmatprep.subr.mxu0 %v3564_v43 }
0x13ce   :  { %2206 = vmatpush1.msra.mxu1 %v3647_v20  ;;  %2277 = vmatpush1.msra.mxu0 %v3567_v44 }
0x13cf   :  { %2207 = vmatprep.subr.mxu1 %v3650_v21  ;;  %2278 = vmatprep.subr.mxu0 %v3570_v45 }
0x13d0   :  { %2208 = vmatpush1.msra.mxu1 %v3653_v23  ;;  %2279 = vmatpush1.msra.mxu0 %v3573_v46 }
0x13d1   :  { %2209 = vmatprep.subr.mxu1 %v3656_v25  ;;  %2280 = vmatprep.subr.mxu0 %v3576_v47 }
0x13d2   :  { %2210 = vmatpush1.msra.mxu1 %v3659_v26  ;;  %2281 = vmatpush1.msra.mxu0 %v3579_v48 }
0x13d3   :  { %2211 = vmatprep.subr.mxu1 %v3662_v27  ;;  %2282 = vmatprep.subr.mxu0 %v3582_v49 }
0x13d4   :  { %2212 = vmatpush1.msra.mxu1 %v3665_v28  ;;  %2283 = vmatpush1.msra.mxu0 %v3585_v50  ;;  %v3819_v28 = vld [vmem:[#allocation4 + $0x230] sm:$0x3] }
0x13d5   :  { %2213 = vmatprep.subr.mxu1 %v3668_v31  ;;  %2284 = vmatprep.subr.mxu0 %v3588_v51 }
0x13d6   :  { %2214 = vmatpush1.msra.mxu1 %v3671_v58  ;;  %2285 = vmatpush1.msra.mxu0 %v3591_v52 }
0x13d7   :  { %2215 = vmatprep.subr.mxu1 %v3674_v59  ;;  %2286 = vmatprep.subr.mxu0 %v3594_v53 }
0x13d8   :  { %2216 = vmatpush1.msra.mxu1 %v3677_v60  ;;  %2287 = vmatpush1.msra.mxu0 %v3597_v54 }
0x13d9   :  { %2217 = vmatprep.subr.mxu1 %v3680_v61  ;;  %2288 = vmatprep.subr.mxu0 %v3600_v55  ;;  %v4203_v55 = vld [vmem:[#allocation38_spill] sm:$0xff] }
0x13da   :  { %2218 = vmatpush1.msra.mxu1 %v3683_v62  ;;  %2289 = vmatpush1.msra.mxu0 %v3603_v56 }
0x13db   :  { %2219 = vmatprep.subr.mxu1 %v3686_v63  ;;  %2290 = vmatprep.subr.mxu0 %v4196_v0  ;;  %v4204_v63 = vmov 0.0  }
0x13dc   :  { %2220 = vmatpush1.msra.mxu1 %v4197_v1  ;;  %2291 = vmatpush1.msra.mxu0 %v4198_v24  ;;  %v3793_v24 = vld [vmem:[#allocation4 + $0x220] sm:$0x3] }
0x13dd   :  { %2221 = vmatprep.subr.mxu1 %v4199_v57  ;;  %2292 = vmatprep.subr.mxu0 %v4200_v2  ;;  %v1880_v2 = vpop.permute.xlu1 %1879  ;;  %4205 = vst [vmem:[#allocation42_spill] sm:$0xff] %v3793_v24  ;;  %v1905_v1 = vld [vmem:[#allocation4 + $0x260] ss:$8 sm:$0x7] }
0x13de   :  { %2222 = vmatpush1.msra.mxu1 %v4201_v3  ;;  %2293 = vmatpush1.msra.mxu0 %v4202_v4  ;;  %v1875_v3 = vld [vmem:[#allocation4 + $0x240] sm:$0x3] }
0x13df   :  { %2223 = vmatprep.subr.mxu1 %v4203_v55  ;;  %2294 = vmatprep.subr.mxu0 %v3711_v22  ;;  %v1892_v57 = vrot.slane %v1875_v3, 1  ;;  %v2154_v22 = vmul.f32 0.0, %v3793_v24  ;;  %v1882_v0 = vmul.f32 %v1880_v2, %v1875_v3  ;;  %v4210_v24 = vld [vmem:[#allocation10_spill] sm:$0xff] }
0x13e0   :  { %2224 = vmatpush1.msra.mxu1 %v3713_v18  ;;  %2257 = vmatprep.mubr.f32.mxu1 %v4204_v63  ;;  %v1876_v18 = vld [vmem:[#allocation4 + $0x248] sm:$0x3]  ;;  %v1914_v52 = vrot.slane %v1905_v1, %v4210_v24 }
0x13e1   :  { %2295 = vmatpush1.msra.mxu0 %v3717_v16  ;;  %2328 = vmatprep.mubr.f32.mxu0 %v4204_v63  ;;  %v1887_v4 = vpop.permute.xlu1 %1886  ;;  %v1893_v56 = vrot.slane %v1876_v18, 1  ;;  %v3796_v16 = vld [vmem:[#allocation4 + $0x228] sm:$0x3]  ;;  %v2160_v61 = vrot.slane %v2154_v22, 1  ;;  %v1883_v53 = vmul.f32 %v1880_v2, %v1876_v18 }
0x13e2   :  { %2388 = vmatprep.subr.mxu1 %v3525_v29  ;;  %2459 = vmatprep.subr.mxu0 %v3527_v30  ;;  %v1898_v55 = vmul.f32 %v1892_v57, %v1887_v4  ;;  %4206 = vst [vmem:[#allocation43_spill] sm:$0xff] %v3796_v16  ;;  %v4207_v63 = vld [vmem:[#allocation9_spill] sm:$0xff]  ;;  %v2155_v60 = vmul.f32 0.0, %v3796_v16 }
0x13e3   :  { %v1910_v62 = vrot.slane %v1905_v1, %v4207_v63  ;;  %v3799_v30 = vld [vmem:[#allocation4 + $0x200] ss:$8 sm:$0xf]  ;;  %v1899_v54 = vmul.f32 %v1893_v56, %v1887_v4  ;;  %v2166_v3 = vadd.f32 %v2160_v61, %v2154_v22 }
0x13e4   :  { %v1901_v29 = vadd.f32 %v1898_v55, %v1882_v0  ;;  %v3806_v57 = vrot.slane %v3799_v30, %v4207_v63  ;;  %v2161_v51 = vrot.slane %v2155_v60, 1  ;;  %v3813_v18 = vrot.slane %v3799_v30, %v4210_v24 }
0x13e5   :  { %v1902_v58 = vadd.f32 %v1899_v54, %v1883_v53 }
0x13e6   :  { %v3802_v59 = vadd.f32 %v1910_v62, %v1901_v29  ;;  %4209 = vst [vmem:[#allocation44_spill] sm:$0xff] %v3806_v57  ;;  %v2167_v22 = vadd.f32 %v2161_v51, %v2155_v60  ;;  %v4211_v60 = vld [vmem:[#allocation11_spill] sm:$0xff] }
0x13e7   :  { %v3815_v16 = vadd.f32 %v1914_v52, %v1902_v58  ;;  %v2156_v58 = vmul.f32 0.0, %v3819_v28 }
0x13e8   :  { %4208 = vst [vmem:[#allocation9_spill] sm:$0xff] %v3802_v59  ;;  %v2169_v56 = vadd.f32 %v2166_v3, %v3802_v59  ;;  %v1877_v59 = vld [vmem:[#allocation4 + $0x250] sm:$0x3] }
0x13e9   :  { %v2170_v54 = vadd.f32 %v2167_v22, %v3815_v16  ;;  %v1884_v51 = vmul.f32 %v1880_v2, %v1877_v59 }
0x1481   :  { %v2079_v31 = vpop.f32.mrf.mxu1  ;;  %v2150_v55 = vpop.f32.mrf.mxu0 }
0x1482   :  { %v2080_v0 = vadd.f32 %v2079_v31, %v3806_v57  ;;  %v1894_v57 = vrot.slane %v1877_v59, 1 }
0x1483   :  { %v2081_v29 = vpop.f32.mrf.mxu1  ;;  %v2152_v62 = vpop.f32.mrf.mxu0 }
0x1484   :  { %v2172_v63 = vadd.f32 %v2169_v56, %v2080_v0  ;;  %v2082_v53 = vadd.f32 %v2081_v29, %v3813_v18  ;;  %v1900_v52 = vmul.f32 %v1894_v57, %v1887_v4  ;;  %v1918_v0 = vrot.slane %v1905_v1, %v4211_v60 }
0x1485   :  { %v2162_v29 = vrot.slane %v2156_v58, 1 }
0x1486   :  { %v2898_v61 = vmul.f32 -1.442695, %v2172_v63  ;;  %v2179_v50 = vadd.f32 %v2170_v54, %v2082_v53  ;;  %v1903_v56 = vadd.f32 %v1900_v52, %v1884_v51  ;;  %v4215_v51 = vld [vmem:[#allocation16_spill] sm:$0xff] }
0x1487   :  { %v2168_v22 = vadd.f32 %v2162_v29, %v2156_v58  ;;  %v4214_v58 = vld [vmem:[#allocation25_spill] sm:$0xff]  ;;  %v4219_v29 = vld [vmem:[#allocation18_spill] sm:$0xff] }
0x1488   :  { %3201 = vpow2.f32 %v2898_v61  ;;  %v2899_v31 = vmul.f32 -1.442695, %v2179_v50  ;;  %v3825_v50 = vrot.slane %v3799_v30, %v4211_v60  ;;  %v3827_v63 = vadd.f32 %v1918_v0, %v1903_v56  ;;  %v4216_v60 = vld [vmem:[#allocation26_spill] sm:$0xff]  ;;  %v4217_v0 = vld [vmem:[#allocation17_spill] sm:$0xff]  ;;  %v4218_v56 = vld [vmem:[#allocation27_spill] sm:$0xff] }
0x148a   :  { %3203 = vpow2.f32 %v2899_v31  ;;  %v2151_v53 = vadd.f32 %v2150_v55, %v3825_v50  ;;  %v2171_v4 = vadd.f32 %v2168_v22, %v3827_v63  ;;  %v4213_v55 = vld [vmem:[#allocation15_spill] sm:$0xff] }
0x148b   :  { %v4221_v22 = vld [vmem:[#allocation19_spill] sm:$0xff] }
0x1495   :  { %v3202_v3 = vpop.eup %3201 }
0x1496   :  { %v2176_v24 = vadd.f32 1.0, %v3202_v3 }
0x1497   :  { %v3204_v62 = vpop.eup %3203 }
0x1498   :  { %3205 = vrcp.f32 %v2176_v24  ;;  %v2183_v61 = vadd.f32 1.0, %v3204_v62  ;;  %v4220_v62 = vld [vmem:[#allocation28_spill] sm:$0xff] }
0x149a   :  { %3207 = vrcp.f32 %v2183_v61  ;;  %v4222_v61 = vld [vmem:[#allocation29_spill] sm:$0xff] }
0x14a5   :  { %v3206_v54 = vpop.eup %3205 }
0x14a6   :  { %v2186_v57 = vmul.f32 %v3206_v54, %v2151_v53  ;;  %v4223_v53 = vld [vmem:[#allocation20_spill] sm:$0xff]  ;;  %v4224_v54 = vld [vmem:[#allocation30_spill] sm:$0xff] }
0x14a7   :  { %v3208_v1 = vpop.eup %3207 }
0x14a8   :  { %v2187_v59 = vadd.f32 %v2186_v57, %v2171_v4  ;;  %v2189_v2 = vsub.f32 1.0, %v3208_v1  ;;  %v2191_v24 = vmul.f32 %v3208_v1, %v3723_v15  ;;  %v4212_v15 = vld [vmem:[#allocation24_spill] sm:$0xff]  ;;  %v4225_v4 = vld [vmem:[#allocation21_spill] sm:$0xff]  ;;  %v4226_v57 = vld [vmem:[#allocation31_spill] sm:$0xff] }
0x14a9   :  { %v4228_v1 = vld [vmem:[#allocation32_spill] sm:$0xff] }
0x14aa   :  { %3209 = vtanh.f32 %v2187_v59  ;;  %v4227_v59 = vld [vmem:[#allocation22_spill] sm:$0xff] }
0x14b7   :  { %v3210_v31 = vpop.eup %3209 }
0x14b8   :  { %v2190_v3 = vmul.f32 %v3210_v31, %v2189_v2  ;;  %v4229_v2 = vld [vmem:[#allocation33_spill] sm:$0xff]  ;;  %v4230_v31 = vld [vmem:[#allocation34_spill] sm:$0xff] }
0x14ba   :  { %v3832_v52 = vadd.f32 %v2191_v24, %v2190_v3  ;;  %v4231_v3 = vld [vmem:[#allocation35_spill] sm:$0xff]  ;;  %v4232_v24 = vld [vmem:[#allocation36_spill] sm:$0xff] }
0x14bc   :  { %2258 = vmatmul.mubr.f32.vlgmr.msra.gmra.mxu1 %v3832_v52  ;;  %2329 = vmatmul.mubr.f32.vlgmr.msra.gmra.mxu0 %v3832_v52 }
0x14bd   :  { %2389 = vmatpush1.msra.mxu1 %v3611_v5  ;;  %2460 = vmatpush1.msra.mxu0 %v3530_v32 }
0x14be   :  { %2390 = vmatprep.subr.mxu1 %v3613_v6  ;;  %2461 = vmatprep.subr.mxu0 %v3533_v33 }
0x14bf   :  { %2391 = vmatpush1.msra.mxu1 %v3616_v7  ;;  %2462 = vmatpush1.msra.mxu0 %v3536_v34 }
0x14c0   :  { %2392 = vmatprep.subr.mxu1 %v3619_v8  ;;  %2463 = vmatprep.subr.mxu0 %v3539_v35 }
0x14c1   :  { %2393 = vmatpush1.msra.mxu1 %v3623_v9  ;;  %2464 = vmatpush1.msra.mxu0 %v3542_v36 }
0x14c2   :  { %2394 = vmatprep.subr.mxu1 %v3626_v10  ;;  %2465 = vmatprep.subr.mxu0 %v3545_v37 }
0x14c3   :  { %2395 = vmatpush1.msra.mxu1 %v3629_v11  ;;  %2466 = vmatpush1.msra.mxu0 %v3549_v39 }
0x14c4   :  { %2396 = vmatprep.subr.mxu1 %v3632_v12  ;;  %2467 = vmatprep.subr.mxu0 %v3552_v38 }
0x14c5   :  { %2397 = vmatpush1.msra.mxu1 %v3635_v13  ;;  %2468 = vmatpush1.msra.mxu0 %v3555_v40 }
0x14c6   :  { %2398 = vmatprep.subr.mxu1 %v3638_v14  ;;  %2469 = vmatprep.subr.mxu0 %v3558_v42 }
0x14c7   :  { %2399 = vmatpush1.msra.mxu1 %v3641_v17  ;;  %2470 = vmatpush1.msra.mxu0 %v3561_v41 }
0x14c8   :  { %2400 = vmatprep.subr.mxu1 %v3644_v19  ;;  %2471 = vmatprep.subr.mxu0 %v3564_v43 }
0x14c9   :  { %2401 = vmatpush1.msra.mxu1 %v3647_v20  ;;  %2472 = vmatpush1.msra.mxu0 %v3567_v44 }
0x14ca   :  { %2402 = vmatprep.subr.mxu1 %v3650_v21  ;;  %2473 = vmatprep.subr.mxu0 %v3570_v45 }
0x14cb   :  { %2403 = vmatpush1.msra.mxu1 %v3653_v23  ;;  %2474 = vmatpush1.msra.mxu0 %v3573_v46 }
0x14cc   :  { %2404 = vmatprep.subr.mxu1 %v3656_v25  ;;  %2475 = vmatprep.subr.mxu0 %v3576_v47 }
0x14cd   :  { %2405 = vmatpush1.msra.mxu1 %v3659_v26  ;;  %2476 = vmatpush1.msra.mxu0 %v3579_v48 }
0x14ce   :  { %2406 = vmatprep.subr.mxu1 %v3662_v27  ;;  %2477 = vmatprep.subr.mxu0 %v3582_v49 }
0x14cf   :  { %2407 = vmatpush1.msra.mxu1 %v4212_v15  ;;  %2478 = vmatpush1.msra.mxu0 %v4213_v55 }
0x14d0   :  { %2408 = vmatprep.subr.mxu1 %v4214_v58  ;;  %2479 = vmatprep.subr.mxu0 %v4215_v51 }
0x14d1   :  { %2409 = vmatpush1.msra.mxu1 %v4216_v60  ;;  %2480 = vmatpush1.msra.mxu0 %v4217_v0  ;;  %v4251_v0 = vld [vmem:[#allocation9_spill] sm:$0xff] }
0x14d2   :  { %2410 = vmatprep.subr.mxu1 %v4218_v56  ;;  %2481 = vmatprep.subr.mxu0 %v4219_v29  ;;  %v4250_v29 = vld [vmem:[#allocation44_spill] sm:$0xff] }
0x14d3   :  { %2411 = vmatpush1.msra.mxu1 %v4220_v62  ;;  %2482 = vmatpush1.msra.mxu0 %v4221_v22 }
0x14d4   :  { %2412 = vmatprep.subr.mxu1 %v4222_v61  ;;  %2483 = vmatprep.subr.mxu0 %v4223_v53  ;;  %v4233_v61 = vld [vmem:[#allocation37_spill] sm:$0xff]  ;;  %v4234_v53 = vld [vmem:[#allocation38_spill] sm:$0xff] }
0x14d5   :  { %2413 = vmatpush1.msra.mxu1 %v4224_v54  ;;  %2484 = vmatpush1.msra.mxu0 %v4225_v4  ;;  %v4235_v54 = vld [vmem:[#allocation39_spill] sm:$0xff]  ;;  %v4236_v4 = vld [vmem:[#allocation40_spill] sm:$0xff] }
0x14d6   :  { %2414 = vmatprep.subr.mxu1 %v4226_v57  ;;  %2485 = vmatprep.subr.mxu0 %v4227_v59  ;;  %v4237_v57 = vmov 0.0   ;;  %v4238_v59 = vld [vmem:[#allocation41_spill] sm:$0xff] }
0x14d7   :  { %2415 = vmatpush1.msra.mxu1 %v4228_v1  ;;  %2486 = vmatpush1.msra.mxu0 %v4229_v2  ;;  %v4239_v2 = vld [vmem:[#allocation12_spill] sm:$0xff] }
0x14d8   :  { %2416 = vmatprep.subr.mxu1 %v4230_v31  ;;  %2487 = vmatprep.subr.mxu0 %v4231_v3  ;;  %v4240_v31 = vld [vmem:[#allocation13_spill] sm:$0xff]  ;;  %v4241_v3 = vld [vmem:[#allocation8_spill] sm:$0xff] }
0x14d9   :  { %2417 = vmatpush1.msra.mxu1 %v4232_v24  ;;  %2488 = vmatpush1.msra.mxu0 %v4233_v61  ;;  %v2007_v24 = vsub.s32 3, %v4241_v3  ;;  %v4248_v3 = vld [vmem:[#allocation43_spill] sm:$0xff] }
0x14da   :  { %2418 = vmatprep.subr.mxu1 %v4234_v53  ;;  %2489 = vmatprep.subr.mxu0 %v4235_v54 }
0x14db   :  { %2419 = vmatpush1.msra.mxu1 %v4236_v4  ;;  %2452 = vmatprep.mubr.f32.mxu1 %v4237_v57  ;;  %v3904_v61 = vrot.slane %v3799_v30, %v2007_v24  ;;  %v4244_v4 = vmov 1   ;;  %v3917_v30 = vrot.slane %v4248_v3, 1 }
0x14dc   :  { %2490 = vmatpush1.msra.mxu0 %v4238_v59  ;;  %2523 = vmatprep.mubr.f32.mxu0 %v4237_v57  ;;  %v4245_v59 = vmov 0  }
0x14dd   :  { %2574 = vmatprep.subr.mxu1 %v4239_v2  ;;  %2645 = vmatprep.subr.mxu0 %v4240_v31  ;;  %4242 = vst [vmem:[#allocation10_spill] sm:$0xff] %v3904_v61  ;;  %v4246_v31 = vld [vmem:[#allocation42_spill] sm:$0xff]  ;;  %4249 = vst [vmem:[#allocation8_spill] sm:$0xff] %v3917_v30 }
0x14de   :  { %v3914_v57 = vrot.slane %v4246_v31, 1 }
0x14e0   :  { %4247 = vst [vmem:[#allocation12_spill] sm:$0xff] %v3914_v57 }
0x157c   :  { %v2330_v53 = vpop.f32.mrf.mxu0  ;;  %v2259_v62 = vpop.f32.mrf.mxu1 }
0x157e   :  { %v2332_v1 = vpop.f32.mrf.mxu0  ;;  %v2261_v58 = vpop.f32.mrf.mxu1 }
0x157f   :  { %v3907_v54 = vadd.f32 %v2332_v1, %v3904_v61 }
0x1581   :  { %4243 = vst [vmem:[#allocation11_spill] sm:$0xff] %v3907_v54  ;;  %2339 = vperm.xlu1 %3166, %v3907_v54  }
0x1585   :  { %3167 = vset.pattern.permute.xlu1 %v4244_v4 }
0x1586   :  { %2346 = vperm.xlu1 %3167, %v3907_v54  }
0x158a   :  { %3168 = vset.pattern.permute.xlu1 %v4245_v59  ;;  %v2260_v59 = vadd.f32 %v2259_v62, %v4250_v29 }
0x15fc   :  { %v2340_v2 = vpop.permute.xlu1 %2339 }
0x15fd   :  { %v2342_v22 = vmul.f32 %v2340_v2, %v4246_v31  ;;  %v2343_v4 = vmul.f32 %v2340_v2, %v4248_v3  ;;  %v2262_v31 = vadd.f32 %v2261_v58, %v3813_v18 }
0x1601   :  { %v2347_v24 = vpop.permute.xlu1 %2346 }
0x1602   :  { %v2358_v1 = vmul.f32 %v3914_v57, %v2347_v24  ;;  %v2359_v61 = vmul.f32 %v3917_v30, %v2347_v24 }
0x1604   :  { %v2361_v54 = vadd.f32 %v2358_v1, %v2342_v22  ;;  %v2362_v56 = vadd.f32 %v2359_v61, %v2343_v4  ;;  %v3928_v22 = vrot.slane %v3819_v28, 1  ;;  %v4285_v1 = vmov 0  }
0x1606   :  { %v2364_v60 = vadd.f32 %v2361_v54, %v4251_v0  ;;  %v2365_v55 = vadd.f32 %v2362_v56, %v3815_v16  ;;  %v2360_v62 = vmul.f32 %v3928_v22, %v2347_v24  ;;  %v4284_v24 = vmov 1  }
0x1608   :  { %v2367_v51 = vadd.f32 %v2364_v60, %v2260_v59  ;;  %v2374_v57 = vadd.f32 %v2365_v55, %v2262_v31  ;;  %v2344_v60 = vmul.f32 %v2340_v2, %v3819_v28 }
0x160a   :  { %v2900_v15 = vmul.f32 -1.442695, %v2367_v51  ;;  %v2901_v49 = vmul.f32 -1.442695, %v2374_v57  ;;  %v2363_v54 = vadd.f32 %v2360_v62, %v2344_v60  ;;  %v2331_v51 = vadd.f32 %v2330_v53, %v3825_v50  ;;  %v4283_v53 = vld [vmem:[#allocation11_spill] sm:$0xff]  ;;  %v4286_v60 = vld [vmem:[#allocation42_spill] sm:$0xff] }
0x160c   :  { %3211 = vpow2.f32 %v2900_v15  ;;  %v2366_v15 = vadd.f32 %v2363_v54, %v3827_v63 }
0x160d   :  { %3213 = vpow2.f32 %v2901_v49 }
0x1619   :  { %v3212_v30 = vpop.eup %3211 }
0x161a   :  { %v2371_v27 = vadd.f32 1.0, %v3212_v30  ;;  %v3214_v61 = vpop.eup %3213 }
0x161b   :  { %v2378_v56 = vadd.f32 1.0, %v3214_v61 }
0x161c   :  { %3215 = vrcp.f32 %v2371_v27 }
0x161d   :  { %3217 = vrcp.f32 %v2378_v56  ;;  %v4287_v56 = vld [vmem:[#allocation12_spill] sm:$0xff] }
0x1629   :  { %v3216_v58 = vpop.eup %3215 }
0x162a   :  { %v2381_v49 = vmul.f32 %v3216_v58, %v2331_v51  ;;  %v3218_v27 = vpop.eup %3217  ;;  %v4288_v58 = vld [vmem:[#allocation8_spill] sm:$0xff] }
0x162b   :  { %v2384_v4 = vsub.f32 1.0, %v3218_v27  ;;  %v2386_v31 = vmul.f32 %v3218_v27, %v3832_v52 }
0x162c   :  { %v2382_v55 = vadd.f32 %v2381_v49, %v2366_v15 }
0x162e   :  { %3219 = vtanh.f32 %v2382_v55 }
0x163b   :  { %v3220_v57 = vpop.eup %3219 }
0x163c   :  { %v2385_v59 = vmul.f32 %v3220_v57, %v2384_v4 }
0x163e   :  { %v3935_v30 = vadd.f32 %v2386_v31, %v2385_v59 }
0x1640   :  { %2453 = vmatmul.mubr.f32.vlgmr.msra.gmra.mxu1 %v3935_v30  ;;  %2524 = vmatmul.mubr.f32.vlgmr.msra.gmra.mxu0 %v3935_v30 }
0x1641   :  { %2575 = vmatpush1.msra.mxu1 %v3611_v5  ;;  %2646 = vmatpush1.msra.mxu0 %v3530_v32  ;;  %v4252_v32 = vld [vmem:[#allocation23_spill] sm:$0xff] }
0x1642   :  { %2576 = vmatprep.subr.mxu1 %v3613_v6  ;;  %2647 = vmatprep.subr.mxu0 %v3533_v33  ;;  %v4253_v33 = vld [vmem:[#allocation14_spill] sm:$0xff]  ;;  %v4268_v5 = vld [vmem:[#allocation31_spill] sm:$0xff] }
0x1643   :  { %2577 = vmatpush1.msra.mxu1 %v3616_v7  ;;  %2648 = vmatpush1.msra.mxu0 %v3536_v34  ;;  %v4254_v34 = vld [vmem:[#allocation24_spill] sm:$0xff]  ;;  %v4269_v6 = vld [vmem:[#allocation22_spill] sm:$0xff] }
0x1644   :  { %2578 = vmatprep.subr.mxu1 %v3619_v8  ;;  %2649 = vmatprep.subr.mxu0 %v3539_v35  ;;  %v4255_v35 = vld [vmem:[#allocation15_spill] sm:$0xff]  ;;  %v4270_v7 = vld [vmem:[#allocation32_spill] sm:$0xff]  ;;  %v4271_v8 = vld [vmem:[#allocation33_spill] sm:$0xff] }
0x1645   :  { %2579 = vmatpush1.msra.mxu1 %v3623_v9  ;;  %2650 = vmatpush1.msra.mxu0 %v3542_v36  ;;  %v4256_v36 = vld [vmem:[#allocation25_spill] sm:$0xff]  ;;  %v4272_v9 = vld [vmem:[#allocation34_spill] sm:$0xff] }
0x1646   :  { %2580 = vmatprep.subr.mxu1 %v3626_v10  ;;  %2651 = vmatprep.subr.mxu0 %v3545_v37  ;;  %v4257_v37 = vld [vmem:[#allocation16_spill] sm:$0xff]  ;;  %v4273_v10 = vld [vmem:[#allocation35_spill] sm:$0xff] }
0x1647   :  { %2581 = vmatpush1.msra.mxu1 %v3629_v11  ;;  %2652 = vmatpush1.msra.mxu0 %v3549_v39  ;;  %v4258_v39 = vld [vmem:[#allocation26_spill] sm:$0xff]  ;;  %v4274_v11 = vld [vmem:[#allocation36_spill] sm:$0xff] }
0x1648   :  { %2582 = vmatprep.subr.mxu1 %v3632_v12  ;;  %2653 = vmatprep.subr.mxu0 %v3552_v38  ;;  %v4259_v38 = vld [vmem:[#allocation17_spill] sm:$0xff] }
0x1649   :  { %2583 = vmatpush1.msra.mxu1 %v3635_v13  ;;  %2654 = vmatpush1.msra.mxu0 %v3555_v40  ;;  %v4260_v40 = vld [vmem:[#allocation27_spill] sm:$0xff]  ;;  %v4275_v12 = vld [vmem:[#allocation37_spill] sm:$0xff]  ;;  %v4276_v13 = vld [vmem:[#allocation38_spill] sm:$0xff] }
0x164a   :  { %2584 = vmatprep.subr.mxu1 %v3638_v14  ;;  %2655 = vmatprep.subr.mxu0 %v3558_v42  ;;  %v4261_v42 = vld [vmem:[#allocation18_spill] sm:$0xff]  ;;  %v4277_v14 = vld [vmem:[#allocation39_spill] sm:$0xff] }
0x164b   :  { %2585 = vmatpush1.msra.mxu1 %v3641_v17  ;;  %2656 = vmatpush1.msra.mxu0 %v3561_v41  ;;  %v4262_v41 = vld [vmem:[#allocation28_spill] sm:$0xff] }
0x164c   :  { %2586 = vmatprep.subr.mxu1 %v3644_v19  ;;  %2657 = vmatprep.subr.mxu0 %v3564_v43  ;;  %v4263_v43 = vld [vmem:[#allocation19_spill] sm:$0xff]  ;;  %v4278_v17 = vld [vmem:[#allocation40_spill] sm:$0xff]  ;;  %v4279_v19 = vmov 0.0  }
0x164d   :  { %2587 = vmatpush1.msra.mxu1 %v3647_v20  ;;  %2658 = vmatpush1.msra.mxu0 %v3567_v44  ;;  %v4264_v44 = vld [vmem:[#allocation29_spill] sm:$0xff] }
0x164e   :  { %2588 = vmatprep.subr.mxu1 %v3650_v21  ;;  %2659 = vmatprep.subr.mxu0 %v3570_v45  ;;  %v4265_v45 = vld [vmem:[#allocation20_spill] sm:$0xff]  ;;  %v4280_v20 = vld [vmem:[#allocation41_spill] sm:$0xff] }
0x164f   :  { %2589 = vmatpush1.msra.mxu1 %v3653_v23  ;;  %2660 = vmatpush1.msra.mxu0 %v3573_v46  ;;  %v4266_v46 = vld [vmem:[#allocation30_spill] sm:$0xff]  ;;  %v4281_v21 = vld [vmem:[#allocation13_spill] sm:$0xff] }
0x1650   :  { %2590 = vmatprep.subr.mxu1 %v3656_v25  ;;  %2661 = vmatprep.subr.mxu0 %v3576_v47  ;;  %v4267_v47 = vld [vmem:[#allocation21_spill] sm:$0xff] }
0x1651   :  { %2591 = vmatpush1.msra.mxu1 %v3659_v26  ;;  %2662 = vmatpush1.msra.mxu0 %v3579_v48  ;;  %v4282_v26 = vld [vmem:[#allocation10_spill] sm:$0xff] }
0x1652   :  { %2592 = vmatprep.subr.mxu1 %v4252_v32  ;;  %2663 = vmatprep.subr.mxu0 %v4253_v33 }
0x1653   :  { %2593 = vmatpush1.msra.mxu1 %v4254_v34  ;;  %2664 = vmatpush1.msra.mxu0 %v4255_v35 }
0x1654   :  { %2594 = vmatprep.subr.mxu1 %v4256_v36  ;;  %2665 = vmatprep.subr.mxu0 %v4257_v37 }
0x1655   :  { %2595 = vmatpush1.msra.mxu1 %v4258_v39  ;;  %2666 = vmatpush1.msra.mxu0 %v4259_v38 }
0x1656   :  { %2596 = vmatprep.subr.mxu1 %v4260_v40  ;;  %2667 = vmatprep.subr.mxu0 %v4261_v42 }
0x1657   :  { %2597 = vmatpush1.msra.mxu1 %v4262_v41  ;;  %2668 = vmatpush1.msra.mxu0 %v4263_v43 }
0x1658   :  { %2598 = vmatprep.subr.mxu1 %v4264_v44  ;;  %2669 = vmatprep.subr.mxu0 %v4265_v45 }
0x1659   :  { %2599 = vmatpush1.msra.mxu1 %v4266_v46  ;;  %2670 = vmatpush1.msra.mxu0 %v4267_v47 }
0x165a   :  { %2600 = vmatprep.subr.mxu1 %v4268_v5  ;;  %2671 = vmatprep.subr.mxu0 %v4269_v6 }
0x165b   :  { %2601 = vmatpush1.msra.mxu1 %v4270_v7  ;;  %2672 = vmatpush1.msra.mxu0 %v4271_v8 }
0x165c   :  { %2602 = vmatprep.subr.mxu1 %v4272_v9  ;;  %2673 = vmatprep.subr.mxu0 %v4273_v10 }
0x165d   :  { %2603 = vmatpush1.msra.mxu1 %v4274_v11  ;;  %2674 = vmatpush1.msra.mxu0 %v4275_v12 }
0x165e   :  { %2604 = vmatprep.subr.mxu1 %v4276_v13  ;;  %2675 = vmatprep.subr.mxu0 %v4277_v14 }
0x165f   :  { %2605 = vmatpush1.msra.mxu1 %v4278_v17  ;;  %2638 = vmatprep.mubr.f32.mxu1 %v4279_v19 }
0x1660   :  { %2676 = vmatpush1.msra.mxu0 %v4280_v20  ;;  %2709 = vmatprep.mubr.f32.mxu0 %v4279_v19 }
0x1661   :  { %2760 = vmatprep.subr.mxu1 %v4281_v21 }
0x1700   :  { %v2525_v23 = vpop.f32.mrf.mxu0  ;;  %v2454_v49 = vpop.f32.mrf.mxu1 }
0x1701   :  { %v2455_v4 = vadd.f32 %v2454_v49, %v4250_v29  ;;  %v2526_v17 = vadd.f32 %v2525_v23, %v3825_v50  ;;  %v3241_v23 = vld [vmem:[#allocation4 + $0x1f0] sm:$0xff] }
0x1702   :  { %v2527_v25 = vpop.f32.mrf.mxu0  ;;  %v2456_v32 = vpop.f32.mrf.mxu1 }
0x1703   :  { %v2528_v52 = vadd.f32 %v2527_v25, %v4282_v26  ;;  %v2457_v39 = vadd.f32 %v2456_v32, %v3813_v18  ;;  %v3249_v32 = vld [vmem:[#allocation4 + $0x170] sm:$0xff] }
0x1705   :  { %v4006_v2 = vadd.f32 %v2528_v52, %v4283_v53 }
0x1707   :  { %2534 = vperm.xlu1 %3168, %v4006_v2  }
0x170b   :  { %3169 = vset.pattern.permute.xlu1 %v4284_v24 }
0x170c   :  { %2541 = vperm.xlu1 %3169, %v4006_v2  }
0x1710   :  { %3170 = vset.pattern.permute.xlu1 %v4285_v1 }
0x1782   :  { %v2535_v62 = vpop.permute.xlu1 %2534 }
0x1783   :  { %v2537_v54 = vmul.f32 %v2535_v62, %v4286_v60  ;;  %v2538_v55 = vmul.f32 %v2535_v62, %v4248_v3  ;;  %v2539_v9 = vmul.f32 %v2535_v62, %v3819_v28  ;;  %v3242_v62 = vld [vmem:[#allocation4 + $0x1d8] sm:$0xff] }
0x1787   :  { %v2542_v61 = vpop.permute.xlu1 %2541 }
0x1788   :  { %v2544_v51 = vmul.f32 %v2542_v61, %v4287_v56  ;;  %v2545_v15 = vmul.f32 %v2542_v61, %v4288_v58  ;;  %v2546_v5 = vmul.f32 %v2542_v61, %v3928_v22 }
0x178a   :  { %v2547_v27 = vadd.f32 %v2544_v51, %v2537_v54  ;;  %v2548_v57 = vadd.f32 %v2545_v15, %v2538_v55  ;;  %v2549_v11 = vadd.f32 %v2546_v5, %v2539_v9 }
0x178c   :  { %v2550_v59 = vadd.f32 %v2547_v27, %v4251_v0  ;;  %v2551_v34 = vadd.f32 %v2548_v57, %v3815_v16  ;;  %v2552_v25 = vadd.f32 %v2549_v11, %v3827_v63  ;;  %v3243_v27 = vld [vmem:[#allocation4 + $0x1d0] sm:$0xff] }
0x178d   :  { %v3245_v57 = vld [vmem:[#allocation4 + $0x1b0] sm:$0xff] }
0x178e   :  { %v2553_v31 = vadd.f32 %v2550_v59, %v2455_v4  ;;  %v2560_v40 = vadd.f32 %v2551_v34, %v2457_v39  ;;  %v3244_v4 = vld [vmem:[#allocation4 + $0x1b8] sm:$0xff]  ;;  %v3253_v39 = vld [vmem:[#allocation4 + $0x130] sm:$0xff] }
0x178f   :  { %v3246_v59 = vld [vmem:[#allocation4 + $0x198] sm:$0xff] }
0x1790   :  { %v2902_v36 = vmul.f32 -1.442695, %v2553_v31  ;;  %v2903_v41 = vmul.f32 -1.442695, %v2560_v40  ;;  %v3248_v31 = vld [vmem:[#allocation4 + $0x178] sm:$0xff] }
0x1791   :  { %v3250_v34 = vld [vmem:[#allocation4 + $0x158] sm:$0xff] }
0x1792   :  { %3221 = vpow2.f32 %v2902_v36  ;;  %v3251_v36 = vld [vmem:[#allocation4 + $0x150] sm:$0xff]  ;;  %v3254_v40 = vld [vmem:[#allocation4 + $0x118] sm:$0xff] }
0x1793   :  { %3223 = vpow2.f32 %v2903_v41  ;;  %v3255_v41 = vld [vmem:[#allocation4 + $0x110] sm:$0xff] }
0x179f   :  { %v3222_v44 = vpop.eup %3221 }
0x17a0   :  { %v2557_v46 = vadd.f32 1.0, %v3222_v44  ;;  %v3224_v7 = vpop.eup %3223  ;;  %v3256_v44 = vld [vmem:[#allocation4 + $0xf8] sm:$0xff] }
0x17a1   :  { %v2564_v13 = vadd.f32 1.0, %v3224_v7 }
0x17a2   :  { %3225 = vrcp.f32 %v2557_v46 }
0x17a3   :  { %3227 = vrcp.f32 %v2564_v13 }
0x17af   :  { %v3226_v21 = vpop.eup %3225 }
0x17b0   :  { %v2567_v52 = vmul.f32 %v3226_v21, %v2526_v17  ;;  %v3228_v54 = vpop.eup %3227 }
0x17b1   :  { %v2570_v51 = vsub.f32 1.0, %v3228_v54  ;;  %v2572_v61 = vmul.f32 %v3228_v54, %v3935_v30  ;;  %v3247_v30 = vld [vmem:[#allocation4 + $0x190] sm:$0xff] }
0x17b2   :  { %v2568_v1 = vadd.f32 %v2567_v52, %v2552_v25 }
0x17b4   :  { %3229 = vtanh.f32 %v2568_v1 }
0x17c1   :  { %v3230_v15 = vpop.eup %3229 }
0x17c2   :  { %v2571_v49 = vmul.f32 %v3230_v15, %v2570_v51 }
0x17c4   :  { %v4025_v55 = vadd.f32 %v2572_v61, %v2571_v49 }
0x17c6   :  { %2639 = vmatmul.mubr.f32.vlgmr.msra.gmra.mxu1 %v4025_v55  ;;  %2710 = vmatmul.mubr.f32.vlgmr.msra.gmra.mxu0 %v4025_v55 }
0x17c7   :  { %2761 = vmatpush1.msra.mxu1 %v3241_v23  ;;  %2824 = vmatprep.mubr.f32.mxu1 %v4279_v19  ;;  %v3252_v19 = vld [vmem:[#allocation4 + $0x138] sm:$0xff] }
0x17c8   :  { %2762 = vmatprep.subr.mxu1 %v3242_v62 }
0x17c9   :  { %2763 = vmatpush1.msra.mxu1 %v3243_v27 }
0x17ca   :  { %2764 = vmatprep.subr.mxu1 %v3244_v4 }
0x17cb   :  { %2765 = vmatpush1.msra.mxu1 %v3245_v57 }
0x17cc   :  { %2766 = vmatprep.subr.mxu1 %v3246_v59 }
0x17cd   :  { %2767 = vmatpush1.msra.mxu1 %v3247_v30 }
0x17ce   :  { %2768 = vmatprep.subr.mxu1 %v3248_v31 }
0x17cf   :  { %2769 = vmatpush1.msra.mxu1 %v3249_v32 }
0x17d0   :  { %2770 = vmatprep.subr.mxu1 %v3250_v34 }
0x17d1   :  { %2771 = vmatpush1.msra.mxu1 %v3251_v36 }
0x17d2   :  { %2772 = vmatprep.subr.mxu1 %v3252_v19 }
0x17d3   :  { %2773 = vmatpush1.msra.mxu1 %v3253_v39 }
0x17d4   :  { %2774 = vmatprep.subr.mxu1 %v3254_v40 }
0x17d5   :  { %2775 = vmatpush1.msra.mxu1 %v3255_v41 }
0x17d6   :  { %2776 = vmatprep.subr.mxu1 %v3256_v44 }
0x17d7   :  { %2777 = vmatpush1.msra.mxu1 %v3579_v48 }
0x17d8   :  { %2778 = vmatprep.subr.mxu1 %v4253_v33 }
0x17d9   :  { %2779 = vmatpush1.msra.mxu1 %v4255_v35 }
0x17da   :  { %2780 = vmatprep.subr.mxu1 %v4257_v37 }
0x17db   :  { %2781 = vmatpush1.msra.mxu1 %v4259_v38 }
0x17dc   :  { %2782 = vmatprep.subr.mxu1 %v4261_v42 }
0x17dd   :  { %2783 = vmatpush1.msra.mxu1 %v4263_v43 }
0x17de   :  { %2784 = vmatprep.subr.mxu1 %v4265_v45 }
0x17df   :  { %2785 = vmatpush1.msra.mxu1 %v4267_v47 }
0x17e0   :  { %2786 = vmatprep.subr.mxu1 %v4269_v6 }
0x17e1   :  { %2787 = vmatpush1.msra.mxu1 %v4271_v8 }
0x17e2   :  { %2788 = vmatprep.subr.mxu1 %v4273_v10 }
0x17e3   :  { %2789 = vmatpush1.msra.mxu1 %v4275_v12 }
0x17e4   :  { %2790 = vmatprep.subr.mxu1 %v4277_v14 }
0x17e5   :  { %2791 = vmatpush1.msra.mxu1 %v4280_v20 }
0x1886   :  { %v2711_v48 = vpop.f32.mrf.mxu0  ;;  %v2640_v6 = vpop.f32.mrf.mxu1 }
0x1887   :  { %v2641_v12 = vadd.f32 %v2640_v6, %v4250_v29  ;;  %v2712_v21 = vadd.f32 %v2711_v48, %v3825_v50 }
0x1888   :  { %v2713_v33 = vpop.f32.mrf.mxu0 }
0x1889   :  { %v2714_v35 = vadd.f32 %v2713_v33, %v4282_v26 }
0x188b   :  { %v2716_v37 = vadd.f32 %v2714_v35, %v4006_v2 }
0x188d   :  { %2720 = vperm.xlu1 %3170, %v2716_v37  }
0x1891   :  { %3171 = vset.pattern.permute.xlu1 %v4284_v24  ;;  %v2642_v24 = vpop.f32.mrf.mxu1 }
0x1892   :  { %2727 = vperm.xlu1 %3171, %v2716_v37  }
0x1908   :  { %v2721_v38 = vpop.permute.xlu1 %2720 }
0x1909   :  { %v2723_v43 = vmul.f32 %v2721_v38, %v4286_v60  ;;  %v2724_v8 = vmul.f32 %v2721_v38, %v4248_v3  ;;  %v2643_v60 = vadd.f32 %v2642_v24, %v3813_v18  ;;  %v2725_v13 = vmul.f32 %v2721_v38, %v3819_v28  ;;  %v1925_v28 = vld [vmem:[#allocation2 + $0x30] sm:$0x1] }
0x190a   :  { %v2531_v23 = vsub.f32 %v4006_v2, %v1925_v28  ;;  %v2717_v50 = vsub.f32 %v2716_v37, %v1925_v28  ;;  %v2336_v59 = vsub.f32 %v4283_v53, %v1925_v28 }
0x190c   :  { %v2833_v27 = vrot.slane %v2531_v23, 7  ;;  %v2836_v57 = vrot.slane %v2717_v50, 6 }
0x190d   :  { %v2728_v42 = vpop.permute.xlu1 %2727 }
0x190e   :  { %v2730_v45 = vmul.f32 %v2728_v42, %v4287_v56  ;;  %v2731_v47 = vmul.f32 %v2728_v42, %v4288_v58  ;;  %v2732_v3 = vmul.f32 %v2728_v42, %v3928_v22 }
0x1910   :  { %v2733_v10 = vadd.f32 %v2730_v45, %v2723_v43  ;;  %v2734_v14 = vadd.f32 %v2731_v47, %v2724_v8 }
0x1912   :  { %v2736_v20 = vadd.f32 %v2733_v10, %v4251_v0  ;;  %v2737_v5 = vadd.f32 %v2734_v14, %v3815_v16  ;;  %v2735_v0 = vadd.f32 %v2732_v3, %v2725_v13 }
0x1914   :  { %v2739_v46 = vadd.f32 %v2736_v20, %v2641_v12  ;;  %v2746_v56 = vadd.f32 %v2737_v5, %v2643_v60  ;;  %v2738_v25 = vadd.f32 %v2735_v0, %v3827_v63 }
0x1916   :  { %v2904_v7 = vmul.f32 -1.442695, %v2739_v46  ;;  %v2905_v9 = vmul.f32 -1.442695, %v2746_v56 }
0x1918   :  { %3231 = vpow2.f32 %v2904_v7 }
0x1919   :  { %3233 = vpow2.f32 %v2905_v9 }
0x1925   :  { %v3232_v58 = vpop.eup %3231 }
0x1926   :  { %v2743_v11 = vadd.f32 1.0, %v3232_v58  ;;  %v3234_v29 = vpop.eup %3233 }
0x1927   :  { %v2750_v17 = vadd.f32 1.0, %v3234_v29 }
0x1928   :  { %3235 = vrcp.f32 %v2743_v11 }
0x1929   :  { %3237 = vrcp.f32 %v2750_v17 }
0x1935   :  { %v3236_v16 = vpop.eup %3235 }
0x1936   :  { %v2753_v18 = vmul.f32 %v3236_v16, %v2712_v21  ;;  %v3238_v1 = vpop.eup %3237 }
0x1937   :  { %v2756_v54 = vsub.f32 1.0, %v3238_v1  ;;  %v2758_v22 = vmul.f32 %v3238_v1, %v4025_v55  ;;  %v2841_v55 = vsel %vm181_vm5, %v2336_v59, %v2833_v27 }
0x1938   :  { %v2754_v52 = vadd.f32 %v2753_v18, %v2738_v25  ;;  %v2843_v32 = vsel %vm2842_vm11, %v2841_v55, %v2836_v57 }
0x193a   :  { %3239 = vtanh.f32 %v2754_v52 }
0x1947   :  { %v3240_v51 = vpop.eup %3239 }
0x1948   :  { %v2757_v15 = vmul.f32 %v3240_v51, %v2756_v54 }
0x194a   :  { %v2759_v49 = vadd.f32 %v2758_v22, %v2757_v15 }
0x194c   :  { %2825 = vmatmul.mubr.f32.vlgmr.msra.gmra.mxu1 %v2759_v49 }
0x1a0c   :  { %v2826_v61 = vpop.f32.mrf.mxu1 }
0x1a0e   :  { %v2827_v62 = vpop.f32.mrf.mxu1 }
0x1a0f   :  { %v2828_v63 = vadd.f32 %v2827_v62, %v4282_v26 }
0x1a11   :  { %v2830_v4 = vadd.f32 %v2828_v63, %v2716_v37 }
0x1a13   :  { %v2831_v30 = vsub.f32 %v2830_v4, %v1925_v28 }
0x1a15   :  { %v2839_v31 = vrot.slane %v2831_v30, 5 }
0x1a17   :  { %v2845_v34 = vsel %vm2844_vm12, %v2843_v32, %v2839_v31 }
0x1a18   :  { %2847 = vst.msk [vmem:[%s4071_s3] sm:$0xf] %vm2846_vm13, %v2845_v34 }
0x1a19   :  { %2852 = vsyncpa [#allocation3], 1 }
0x1a1a   :  { %2853 = vsyncpa [#allocation5], 1 }

</bundles_post_ra>
